<compile_context>
chip_gen: v7x
topology: tpu7x:2x2x1
jax: 0.10.0
libtpu: 0.0.40
codegen_flags: <defaults>
</compile_context>

<pallas_src>
import jax
import jax.numpy as jnp
from jax.experimental import pallas as pl
from jax.experimental.pallas import tpu as pltpu

IN_DIM = 28 * 28     # 784
HID = 600
OUT_DIM = 10

HID_PAD = 768        # 3 * 256: fills the 256-wide MXU on v6e/v7x, 128-aligned
OUT_PAD = 128        # lane-dense output slab; logits live in [:, :10]
TB_MAX = 256         # batch tile (multiple of 16 for bf16 sublane packing)


def _round_up(x, m):
    return (x + m - 1) // m * m


def _pad2(a, rows, cols):
    return jnp.pad(a, ((0, rows - a.shape[0]), (0, cols - a.shape[1])))


def mlp_kernel(x_ref, w1_ref, b1_ref, w2_ref, b2_ref, w3_ref, b3_ref, o_ref):
    # Three MXU matmuls with f32 accumulation; biases are added in f32, then
    # the activation is narrowed back to bf16 for the next MXU pass.
    x = x_ref[...]                                                    # (TB, 784) bf16
    h1 = jnp.dot(x, w1_ref[...], preferred_element_type=jnp.float32) + b1_ref[...]
    h1 = h1.astype(jnp.bfloat16)                                      # (TB, 768)
    h2 = jnp.dot(h1, w2_ref[...], preferred_element_type=jnp.float32) + b2_ref[...]
    h2 = h2.astype(jnp.bfloat16)                                      # (TB, 768)
    o_ref[...] = (
        jnp.dot(h2, w3_ref[...], preferred_element_type=jnp.float32) + b3_ref[...]
    )                                                                 # (TB, 128) f32


def neural_network_forward(x_nchw, params):
    """x_nchw: (N, 1, 28, 28) float32. Returns logits (N, 10) float32."""
    w1, b1, w2, b2, w3, b3 = params          # (in, out) layout, float32
    n = x_nchw.shape[0]
    x2d = x_nchw.reshape(n, -1)              # nn.Flatten on NCHW: (N, 784)

    # --- layout plumbing (zero padding -> results mathematically unchanged) --
    w1p = _pad2(w1, IN_DIM, HID_PAD).astype(jnp.bfloat16)     # (784, 768)
    w2p = _pad2(w2, HID_PAD, HID_PAD).astype(jnp.bfloat16)    # (768, 768)
    w3p = _pad2(w3, HID_PAD, OUT_PAD).astype(jnp.bfloat16)    # (768, 128)
    b1p = _pad2(b1, 1, HID_PAD)                               # f32 (1, 768)
    b2p = _pad2(b2, 1, HID_PAD)                               # f32 (1, 768)
    b3p = _pad2(b3, 1, OUT_PAD)                               # f32 (1, 128)

    tb = TB_MAX if n >= TB_MAX else _round_up(max(n, 1), 16)
    n_pad = _round_up(n, tb)
    xp = _pad2(x2d, n_pad, IN_DIM).astype(jnp.bfloat16)       # (n_pad, 784)

    resident = lambda i: (0, 0)   # weights/biases: same block every grid step

    out = pl.pallas_call(
        mlp_kernel,
        out_shape=jax.ShapeDtypeStruct((n_pad, OUT_PAD), jnp.float32),
        grid=(pl.cdiv(n_pad, tb),),
        in_specs=[
            pl.BlockSpec((tb, IN_DIM), lambda i: (i, 0)),      # x tile, pipelined
            pl.BlockSpec((IN_DIM, HID_PAD), resident),
            pl.BlockSpec((1, HID_PAD), resident),
            pl.BlockSpec((HID_PAD, HID_PAD), resident),
            pl.BlockSpec((1, HID_PAD), resident),
            pl.BlockSpec((HID_PAD, OUT_PAD), resident),
            pl.BlockSpec((1, OUT_PAD), resident),
        ],
        out_specs=pl.BlockSpec((tb, OUT_PAD), lambda i: (i, 0)),
        compiler_params=pltpu.CompilerParams(
            dimension_semantics=("parallel",),   # megacore sharding on v7x
        ),
    )(xp, w1p, b1p, w2p, b2p, w3p, b3p)

    return out[:n, :OUT_DIM]


def init_params(key):
    """Deterministic init mimicking nn.Linear default (U[-1/sqrt(fan_in), +))."""
    ks = jax.random.split(key, 6)

    def linear(kw, kb, fan_in, fan_out):
        bound = 1.0 / jnp.sqrt(jnp.float32(fan_in))
        w = jax.random.uniform(kw, (fan_in, fan_out), jnp.float32, -bound, bound)
        b = jax.random.uniform(kb, (1, fan_out), jnp.float32, -bound, bound)
        return w, b

    w1, b1 = linear(ks[0], ks[1], IN_DIM, HID)
    w2, b2 = linear(ks[2], ks[3], HID, HID)
    w3, b3 = linear(ks[4], ks[5], HID, OUT_DIM)
    return (w1, b1, w2, b2, w3, b3)


if __name__ == "__main__":
    key = jax.random.PRNGKey(0)
    k_x, k_p = jax.random.split(key)

    # Small batch of MNIST-shaped inputs (NCHW).
    x = jax.random.normal(k_x, (2, 1, 28, 28), dtype=jnp.float32)
    params = init_params(k_p)

    out = jax.block_until_ready(neural_network_forward(x, params))
    assert out.shape == (2, OUT_DIM)
    assert out.dtype == jnp.float32

    w1, b1, w2, b2, w3, b3 = params

    # Reference 1: same mixed precision as the kernel (bf16 weights/acts,
    # f32 accumulation and bias adds) -> should match tightly.
    xb = x.reshape(2, -1).astype(jnp.bfloat16)
    h1 = (jnp.dot(xb, w1.astype(jnp.bfloat16),
                  preferred_element_type=jnp.float32) + b1).astype(jnp.bfloat16)
    h2 = (jnp.dot(h1, w2.astype(jnp.bfloat16),
                  preferred_element_type=jnp.float32) + b2).astype(jnp.bfloat16)
    ref_bf16 = jnp.dot(h2, w3.astype(jnp.bfloat16),
                       preferred_element_type=jnp.float32) + b3
    assert jnp.allclose(out, ref_bf16, atol=2e-3, rtol=2e-3), "mismatch vs bf16 ref"

    # Reference 2: full-f32 forward (sanity check; bf16 weight cast gives ~1% drift).
    xf = x.reshape(2, -1)
    ref_f32 = ((xf @ w1 + b1) @ w2 + b2) @ w3 + b3
    assert jnp.allclose(out, ref_f32, atol=1e-1, rtol=1e-1), "mismatch vs f32 ref"

    print("KERNEL_OK")
</pallas_src>

<mosaic_0001>
module attributes {stable_mosaic.version = 11 : i64} {
  func.func @mlp_kernel(%arg0: i32, %arg1: memref<16x784xbf16, #tpu.memory_space<vmem>>, %arg2: memref<784x768xbf16, #tpu.memory_space<vmem>>, %arg3: memref<1x768xf32, #tpu.memory_space<vmem>>, %arg4: memref<768x768xbf16, #tpu.memory_space<vmem>>, %arg5: memref<1x768xf32, #tpu.memory_space<vmem>>, %arg6: memref<768x128xbf16, #tpu.memory_space<vmem>>, %arg7: memref<1x128xf32, #tpu.memory_space<vmem>>, %arg8: memref<16x128xf32, #tpu.memory_space<vmem>>) attributes {dimension_semantics = [#tpu.dimension_semantics<parallel>], iteration_bounds = array<i64: 1>, scalar_prefetch = 0 : i64, scratch_operands = 0 : i64, tpu.core_type = #tpu.core_type<tc>, window_params = [{transform_indices = @transform_0, window_bounds = array<i64: 16, 784>}, {pipeline_mode = #tpu.pipeline_mode<synchronous>, transform_indices = @transform_1, window_bounds = array<i64: 784, 768>}, {pipeline_mode = #tpu.pipeline_mode<synchronous>, transform_indices = @transform_2, window_bounds = array<i64: 1, 768>}, {pipeline_mode = #tpu.pipeline_mode<synchronous>, transform_indices = @transform_3, window_bounds = array<i64: 768, 768>}, {pipeline_mode = #tpu.pipeline_mode<synchronous>, transform_indices = @transform_4, window_bounds = array<i64: 1, 768>}, {pipeline_mode = #tpu.pipeline_mode<synchronous>, transform_indices = @transform_5, window_bounds = array<i64: 768, 128>}, {pipeline_mode = #tpu.pipeline_mode<synchronous>, transform_indices = @transform_6, window_bounds = array<i64: 1, 128>}, {transform_indices = @transform_7, window_bounds = array<i64: 16, 128>}]} {
    %c0 = arith.constant 0 : index
    %c0_0 = arith.constant 0 : index
    %0 = vector.load %arg1[%c0, %c0_0] : memref<16x784xbf16, #tpu.memory_space<vmem>>, vector<16x784xbf16>
    %c0_1 = arith.constant 0 : index
    %c0_2 = arith.constant 0 : index
    %1 = vector.load %arg2[%c0_1, %c0_2] : memref<784x768xbf16, #tpu.memory_space<vmem>>, vector<784x768xbf16>
    %cst = arith.constant dense<0.000000e+00> : vector<16x768xf32>
    %2 = tpu.matmul %0, %1, %cst {dimension_numbers = #tpu.dot_dimension_numbers<[1], [0], [0], [1], [0, 0, 1, 1], [], []>} : vector<16x784xbf16>, vector<784x768xbf16>, vector<16x768xf32> -> vector<16x768xf32>
    %c0_3 = arith.constant 0 : index
    %c0_4 = arith.constant 0 : index
    %3 = vector.load %arg3[%c0_3, %c0_4] : memref<1x768xf32, #tpu.memory_space<vmem>>, vector<1x768xf32>
    %4 = vector.broadcast %3 : vector<1x768xf32> to vector<16x768xf32>
    %5 = arith.addf %2, %4 : vector<16x768xf32>
    %6 = arith.truncf %5 : vector<16x768xf32> to vector<16x768xbf16>
    %c0_5 = arith.constant 0 : index
    %c0_6 = arith.constant 0 : index
    %7 = vector.load %arg4[%c0_5, %c0_6] : memref<768x768xbf16, #tpu.memory_space<vmem>>, vector<768x768xbf16>
    %cst_7 = arith.constant dense<0.000000e+00> : vector<16x768xf32>
    %8 = tpu.matmul %6, %7, %cst_7 {dimension_numbers = #tpu.dot_dimension_numbers<[1], [0], [0], [1], [0, 0, 1, 1], [], []>} : vector<16x768xbf16>, vector<768x768xbf16>, vector<16x768xf32> -> vector<16x768xf32>
    %c0_8 = arith.constant 0 : index
    %c0_9 = arith.constant 0 : index
    %9 = vector.load %arg5[%c0_8, %c0_9] : memref<1x768xf32, #tpu.memory_space<vmem>>, vector<1x768xf32>
    %10 = vector.broadcast %9 : vector<1x768xf32> to vector<16x768xf32>
    %11 = arith.addf %8, %10 : vector<16x768xf32>
    %12 = arith.truncf %11 : vector<16x768xf32> to vector<16x768xbf16>
    %c0_10 = arith.constant 0 : index
    %c0_11 = arith.constant 0 : index
    %13 = vector.load %arg6[%c0_10, %c0_11] : memref<768x128xbf16, #tpu.memory_space<vmem>>, vector<768x128xbf16>
    %cst_12 = arith.constant dense<0.000000e+00> : vector<16x128xf32>
    %14 = tpu.matmul %12, %13, %cst_12 {dimension_numbers = #tpu.dot_dimension_numbers<[1], [0], [0], [1], [0, 0, 1, 1], [], []>} : vector<16x768xbf16>, vector<768x128xbf16>, vector<16x128xf32> -> vector<16x128xf32>
    %c0_13 = arith.constant 0 : index
    %c0_14 = arith.constant 0 : index
    %15 = vector.load %arg7[%c0_13, %c0_14] : memref<1x128xf32, #tpu.memory_space<vmem>>, vector<1x128xf32>
    %16 = vector.broadcast %15 : vector<1x128xf32> to vector<16x128xf32>
    %17 = arith.addf %14, %16 : vector<16x128xf32>
    %c0_15 = arith.constant 0 : index
    %c0_16 = arith.constant 0 : index
    %18 = vector.load %arg8[%c0_15, %c0_16] : memref<16x128xf32, #tpu.memory_space<vmem>>, vector<16x128xf32>
    tpu.vector_store %arg8[%c0_15, %c0_16], %17 {strides = array<i32>} : memref<16x128xf32, #tpu.memory_space<vmem>>, vector<16x128xf32>,
    return
  }
  func.func @transform_0(%arg0: i32) -> (i32, i32) {
    %c0_i32 = arith.constant 0 : i32
    %c0_i32_0 = arith.constant 0 : i32
    return %arg0, %c0_i32 : i32, i32
  }
  func.func @transform_1(%arg0: i32) -> (i32, i32) {
    %c0_i32 = arith.constant 0 : i32
    %c0_i32_0 = arith.constant 0 : i32
    %c0_i32_1 = arith.constant 0 : i32
    return %c0_i32, %c0_i32_0 : i32, i32
  }
  func.func @transform_2(%arg0: i32) -> (i32, i32) {
    %c0_i32 = arith.constant 0 : i32
    %c0_i32_0 = arith.constant 0 : i32
    %c0_i32_1 = arith.constant 0 : i32
    return %c0_i32, %c0_i32_0 : i32, i32
  }
  func.func @transform_3(%arg0: i32) -> (i32, i32) {
    %c0_i32 = arith.constant 0 : i32
    %c0_i32_0 = arith.constant 0 : i32
    %c0_i32_1 = arith.constant 0 : i32
    return %c0_i32, %c0_i32_0 : i32, i32
  }
  func.func @transform_4(%arg0: i32) -> (i32, i32) {
    %c0_i32 = arith.constant 0 : i32
    %c0_i32_0 = arith.constant 0 : i32
    %c0_i32_1 = arith.constant 0 : i32
    return %c0_i32, %c0_i32_0 : i32, i32
  }
  func.func @transform_5(%arg0: i32) -> (i32, i32) {
    %c0_i32 = arith.constant 0 : i32
    %c0_i32_0 = arith.constant 0 : i32
    %c0_i32_1 = arith.constant 0 : i32
    return %c0_i32, %c0_i32_0 : i32, i32
  }
  func.func @transform_6(%arg0: i32) -> (i32, i32) {
    %c0_i32 = arith.constant 0 : i32
    %c0_i32_0 = arith.constant 0 : i32
    %c0_i32_1 = arith.constant 0 : i32
    return %c0_i32, %c0_i32_0 : i32, i32
  }
  func.func @transform_7(%arg0: i32) -> (i32, i32) {
    %c0_i32 = arith.constant 0 : i32
    %c0_i32_0 = arith.constant 0 : i32
    return %arg0, %c0_i32 : i32, i32
  }
}

</mosaic_0001>

<bundles_post_ra>
// kernel: tpu_custom_call.1
= control target key start
LH: loop header
LB: loop body
LE: loop exit
PB: predicated region body
PF: predicated region fallthrough
CT: control target
= control target key end

     0   :  { %12 = vsyncpa [#allocation3], 0  ;;  %s7340_s0 = inlined_call_operand.hbm [shape: bf16[16,784], index: 0, kind: input, shape index: {}]   ;;  %s7341_s1 = inlined_call_operand.hbm [shape: bf16[784,768], index: 1, kind: input, shape index: {}]   ;;  %s7342_s2 = inlined_call_operand.hbm [shape: f32[1,768], index: 2, kind: input, shape index: {}]   ;;  %s7343_s3 = inlined_call_operand.hbm [shape: bf16[768,768], index: 3, kind: input, shape index: {}]   ;;  %s7344_s4 = inlined_call_operand.hbm [shape: f32[1,768], index: 4, kind: input, shape index: {}]   ;;  %s7345_s5 = inlined_call_operand.hbm [shape: bf16[768,128], index: 5, kind: input, shape index: {}]   ;;  %s7346_s6 = inlined_call_operand.hbm [shape: f32[1,128], index: 6, kind: input, shape index: {}]   ;;  %s7347_s7 = inlined_call_operand.hbm [shape: f32[16,128], index: 7, kind: output, shape index: {}]  }
   0x1   :  { %13 = vsyncpa [#allocation6], 0 }
   0x2   :  { %14 = vsyncpa [#allocation9], 0 }
   0x3   :  { %15 = vsyncpa [#allocation12], 0 }
   0x4   :  { %16 = vsyncpa [#allocation4], 0  ;;  %s7103_s24 = smov [#allocation5]   ;;  %s6917_s28 = scalar_lea.hbm %s7341_s1, 37632 }
   0x5   :  { %s34_s25 = sshll.u32 %s7103_s24, 4  ;;  %p6918_p0 = scmp.ne.s32.totalorder %s7341_s1, %s6917_s28  ;;  %s35_s25 = int_to_ptr.vmem [resolvable:$true] %s34_s25 }
   0x6   :  { %p6921_p1 = scmp.lt.u32.totalorder %s6917_s28, %s7341_s1 }
   0x8   :  { %p6923_p2 = pnand %p6921_p1, %p6918_p0 }
   0xa   :  { %6926 = shalt.err (!%p6923_p2)
}
   0xb   :  { %s6927_s10 = scalar_lea.vmem %s35_s25, 37632  ;;  %p6932_p4 = scmp.lt.s32.totalorder %s35_s25, %s35_s25 }
   0xc   :  { %p6928_p3 = scmp.ne.s32.totalorder %s35_s25, %s6927_s10  ;;  %p6933_p5 = scmp.lt.s32.totalorder %s6927_s10, %s6927_s10 }
   0xe   :  { %p6934_p6 = por %p6933_p5, %p6932_p4 }
  0x10   :  { %p6935_p7 = pnand %p6934_p6, %p6928_p3 }
  0x12   :  { %6938 = shalt.err (!%p6935_p7)
}
  0x13   :  { %s7104_s11 = smov 384   ;;  %s7105_s12 = smov 24  }
  0x14   :  { %40 = dma.hbm_to_vmem [thread:$0]  %s7341_s1, 37632, %s35_s25, [#allocation6], %s7104_s11, %s7104_s11, %s7105_s12  }
  0x15   :  { %s7106_s15 = smov [#allocation8]   ;;  %s7107_s17 = smov [#allocation11]  }
  0x16   :  { %s56_s16 = sshll.u32 %s7106_s15, 4  ;;  %s78_s18 = sshll.u32 %s7107_s17, 4  ;;  %s57_s16 = int_to_ptr.vmem [resolvable:$true] %s56_s16  ;;  %s79_s18 = int_to_ptr.vmem [resolvable:$true] %s78_s18 }
  0x17   :  { %s6939_s21 = scalar_lea.hbm %s7343_s3, 36864 }
  0x18   :  { %p6940_p8 = scmp.ne.s32.totalorder %s7343_s3, %s6939_s21  ;;  %p6943_p9 = scmp.lt.u32.totalorder %s6939_s21, %s7343_s3 }
  0x1a   :  { %p6945_p10 = pnand %p6943_p9, %p6940_p8 }
  0x1c   :  { %6948 = shalt.err (!%p6945_p10)
}
  0x1d   :  { %s6949_s1 = scalar_lea.vmem %s57_s16, 36864  ;;  %p6954_p12 = scmp.lt.s32.totalorder %s57_s16, %s57_s16 }
  0x1e   :  { %p6950_p11 = scmp.ne.s32.totalorder %s57_s16, %s6949_s1  ;;  %p6955_p13 = scmp.lt.s32.totalorder %s6949_s1, %s6949_s1 }
  0x20   :  { %p6956_p0 = por %p6955_p13, %p6954_p12 }
  0x22   :  { %p6957_p1 = pnand %p6956_p0, %p6950_p11 }
  0x24   :  { %6960 = shalt.err (!%p6957_p1)
}
  0x25   :  { %62 = dma.hbm_to_vmem [thread:$0]  %s7343_s3, 36864, %s57_s16, [#allocation9], %s7104_s11, %s7104_s11, %s7105_s12  }
  0x26   :  { %s6961_s30 = scalar_lea.hbm %s7345_s5, 6144 }
  0x27   :  { %p6962_p2 = scmp.ne.s32.totalorder %s7345_s5, %s6961_s30  ;;  %p6965_p3 = scmp.lt.u32.totalorder %s6961_s30, %s7345_s5 }
  0x29   :  { %p6967_p4 = pnand %p6965_p3, %p6962_p2 }
  0x2b   :  { %6970 = shalt.err (!%p6967_p4)
}
  0x2c   :  { %s6971_s14 = scalar_lea.vmem %s79_s18, 6144  ;;  %p6976_p6 = scmp.lt.s32.totalorder %s79_s18, %s79_s18 }
  0x2d   :  { %p6972_p5 = scmp.ne.s32.totalorder %s79_s18, %s6971_s14  ;;  %p6977_p7 = scmp.lt.s32.totalorder %s6971_s14, %s6971_s14 }
  0x2f   :  { %p6978_p8 = por %p6977_p7, %p6976_p6 }
  0x31   :  { %p6979_p9 = pnand %p6978_p8, %p6972_p5 }
  0x33   :  { %6982 = shalt.err (!%p6979_p9)
}
  0x34   :  { %s7108_s3 = smov 64   ;;  %s7109_s11 = smov 4  }
  0x35   :  { %84 = dma.hbm_to_vmem [thread:$0]  %s7345_s5, 6144, %s79_s18, [#allocation12], %s7108_s3, %s7108_s3, %s7109_s11  }
  0x36   :  { %s7110_s16 = smov [#allocation2]   ;;  %s6983_s21 = scalar_lea.hbm %s7340_s0, 896 }
  0x37   :  { %s22_s17 = sshll.u32 %s7110_s16, 4  ;;  %p6984_p10 = scmp.ne.s32.totalorder %s7340_s0, %s6983_s21  ;;  %s23_s17 = int_to_ptr.vmem [resolvable:$true] %s22_s17 }
  0x38   :  { %p6987_p11 = scmp.lt.u32.totalorder %s6983_s21, %s7340_s0 }
  0x3a   :  { %p6989_p12 = pnand %p6987_p11, %p6984_p10 }
  0x3c   :  { %6992 = shalt.err (!%p6989_p12)
}
  0x3d   :  { %s6993_s1 = scalar_lea.vmem %s23_s17, 896  ;;  %p6998_p0 = scmp.lt.s32.totalorder %s23_s17, %s23_s17 }
  0x3e   :  { %p6994_p13 = scmp.ne.s32.totalorder %s23_s17, %s6993_s1  ;;  %p6999_p1 = scmp.lt.s32.totalorder %s6993_s1, %s6993_s1 }
  0x40   :  { %p7000_p2 = por %p6999_p1, %p6998_p0 }
  0x42   :  { %p7001_p3 = pnand %p7000_p2, %p6994_p13 }
  0x44   :  { %7004 = shalt.err (!%p7001_p3)
}
  0x45   :  { %s7111_s5 = smov 448   ;;  %s7112_s18 = smov 28  }
  0x46   :  { %28 = dma.hbm_to_vmem [thread:$0]  %s7340_s0, 896, %s23_s17, [#allocation3], %s7111_s5, %s7111_s5, %s7112_s18  }
  0x47   :  { %s7113_s28 = smov [#allocation7]   ;;  %s7114_s30 = smov [#allocation10]  }
  0x48   :  { %s47_s29 = sshll.u32 %s7113_s28, 4  ;;  %s69_s8 = sshll.u32 %s7114_s30, 4  ;;  %s48_s29 = int_to_ptr.vmem [resolvable:$true] %s47_s29  ;;  %s70_s8 = int_to_ptr.vmem [resolvable:$true] %s69_s8 }
  0x49   :  { %s7005_s13 = scalar_lea.hbm %s7342_s2, 96 }
  0x4a   :  { %p7006_p4 = scmp.ne.s32.totalorder %s7342_s2, %s7005_s13  ;;  %p7009_p5 = scmp.lt.u32.totalorder %s7005_s13, %s7342_s2 }
  0x4c   :  { %p7011_p6 = pnand %p7009_p5, %p7006_p4 }
  0x4e   :  { %7014 = shalt.err (!%p7011_p6)
}
  0x4f   :  { %s7015_s0 = scalar_lea.vmem %s48_s29, 96  ;;  %p7020_p8 = scmp.lt.s32.totalorder %s48_s29, %s48_s29 }
  0x50   :  { %p7016_p7 = scmp.ne.s32.totalorder %s48_s29, %s7015_s0  ;;  %p7021_p9 = scmp.lt.s32.totalorder %s7015_s0, %s7015_s0 }
  0x52   :  { %p7022_p10 = por %p7021_p9, %p7020_p8 }
  0x54   :  { %p7023_p11 = pnand %p7022_p10, %p7016_p7 }
  0x56   :  { %7026 = shalt.err (!%p7023_p11)
}
  0x57   :  { %50 = dma.hbm_to_vmem [thread:$0]  %s7342_s2, 96, %s48_s29, [#allocation6]  }
  0x58   :  { %s7027_s20 = scalar_lea.hbm %s7344_s4, 96 }
  0x59   :  { %p7028_p12 = scmp.ne.s32.totalorder %s7344_s4, %s7027_s20  ;;  %p7031_p13 = scmp.lt.u32.totalorder %s7027_s20, %s7344_s4 }
  0x5b   :  { %p7033_p0 = pnand %p7031_p13, %p7028_p12 }
  0x5d   :  { %7036 = shalt.err (!%p7033_p0)
}
  0x5e   :  { %s7037_s26 = scalar_lea.vmem %s70_s8, 96  ;;  %p7042_p2 = scmp.lt.s32.totalorder %s70_s8, %s70_s8 }
  0x5f   :  { %p7038_p1 = scmp.ne.s32.totalorder %s70_s8, %s7037_s26  ;;  %p7043_p3 = scmp.lt.s32.totalorder %s7037_s26, %s7037_s26 }
  0x61   :  { %p7044_p4 = por %p7043_p3, %p7042_p2 }
  0x63   :  { %p7045_p5 = pnand %p7044_p4, %p7038_p1 }
  0x65   :  { %7048 = shalt.err (!%p7045_p5)
}
  0x66   :  { %72 = dma.hbm_to_vmem [thread:$0]  %s7344_s4, 96, %s70_s8, [#allocation9]  }
  0x67   :  { %s7115_s5 = smov [#allocation13]   ;;  %s7049_s28 = scalar_lea.hbm %s7346_s6, 16 }
  0x68   :  { %s91_s18 = sshll.u32 %s7115_s5, 4  ;;  %p7050_p6 = scmp.ne.s32.totalorder %s7346_s6, %s7049_s28  ;;  %s92_s18 = int_to_ptr.vmem [resolvable:$true] %s91_s18 }
  0x69   :  { %p7053_p7 = scmp.lt.u32.totalorder %s7049_s28, %s7346_s6 }
  0x6b   :  { %p7055_p8 = pnand %p7053_p7, %p7050_p6 }
  0x6d   :  { %7058 = shalt.err (!%p7055_p8)
}
  0x6e   :  { %s7059_s13 = scalar_lea.vmem %s92_s18, 16  ;;  %s7063_s4 = scalar_lea.vmem %s92_s18, 32 }
  0x6f   :  { %p7060_p9 = scmp.ne.s32.totalorder %s92_s18, %s7059_s13  ;;  %p7064_p10 = scmp.lt.s32.totalorder %s92_s18, %s92_s18 }
  0x70   :  { %p7065_p11 = scmp.lt.s32.totalorder %s7063_s4, %s7059_s13 }
  0x72   :  { %p7066_p12 = por %p7065_p11, %p7064_p10 }
  0x74   :  { %p7067_p13 = pnand %p7066_p12, %p7060_p9 }
  0x76   :  { %7070 = shalt.err (!%p7067_p13)
}
  0x77   :  { %94 = dma.hbm_to_vmem [thread:$0]  %s7346_s6, 16, %s92_s18, [#allocation12]  }
  0x78   :  { %7093 = dma.done.wait [#allocation3], 896  }
  0x79   :  { %7094 = vsyncadd [#allocation3], 4294966400 }
  0x7a   :  { %7095 = dma.done.wait [#allocation6], 37728  }
  0x7b   :  { %7096 = vsyncadd [#allocation6], 4294929568 }
  0x7c   :  { %7097 = dma.done.wait [#allocation9], 36960  }
  0x7d   :  { %7098 = vsyncadd [#allocation9], 4294930336 }
  0x7e   :  { %7099 = dma.done.wait [#allocation12], 6160  }
  0x7f   :  { %7100 = vsyncadd [#allocation12], 4294961136  ;;  %v5979_v0 = vld [vmem:[#allocation5 + $0x4] ss:$24 sps:$4 sm:$0xff]   ;;  %v5981_v1 = vld [vmem:[#allocation5] ss:$24 sps:$4 sm:$0xff]  }
  0x80   :  { %1960 = vmatprep.subr.bf16.mxu0 %v5979_v0  ;;  %v5982_v2 = vld [vmem:[#allocation5 + $0x34] ss:$24 sps:$4 sm:$0xff]   ;;  %v5984_v3 = vld [vmem:[#allocation5 + $0x30] ss:$24 sps:$4 sm:$0xff]   ;;  %v5985_v4 = vld [vmem:[#allocation5 + $0x64] ss:$24 sps:$4 sm:$0xff]  }
  0x81   :  { %1961 = vmatpush1.bf16.msra.mxu0 %v5981_v1  ;;  %v5987_v5 = vld [vmem:[#allocation5 + $0x60] ss:$24 sps:$4 sm:$0xff]   ;;  %v5994_v6 = vld [vmem:[#allocation5 + $0xc] ss:$24 sps:$4 sm:$0xff]   ;;  %v6000_v9 = vld [vmem:[#allocation5 + $0x3c] ss:$24 sps:$4 sm:$0xff]  }
  0x82   :  { %1962 = vmatprep.subr.bf16.mxu0 %v5982_v2  ;;  %v5996_v7 = vld [vmem:[#allocation5 + $0x8] ss:$24 sps:$4 sm:$0xff]   ;;  %v5988_v8 = vld [vmem:[#allocation5 + $0x94] ss:$24 sps:$4 sm:$0xff]   ;;  %2132 = vmatprep.subr.bf16.mxu1 %v5994_v6  ;;  %v6002_v10 = vld [vmem:[#allocation5 + $0x38] ss:$24 sps:$4 sm:$0xff]  }
  0x83   :  { %2133 = vmatpush1.bf16.msra.mxu1 %v5996_v7  ;;  %v5990_v11 = vld [vmem:[#allocation5 + $0x90] ss:$24 sps:$4 sm:$0xff]   ;;  %v5991_v12 = vld [vmem:[#allocation5 + $0xc4] ss:$24 sps:$4 sm:$0xff]   ;;  %v5993_v15 = vld [vmem:[#allocation5 + $0xc0] ss:$24 sps:$4 sm:$0xff]  }
  0x84   :  { %2134 = vmatprep.subr.bf16.mxu1 %v6000_v9  ;;  %v6006_v13 = vld [vmem:[#allocation5 + $0x6c] ss:$24 sps:$4 sm:$0xff]   ;;  %v6008_v14 = vld [vmem:[#allocation5 + $0x68] ss:$24 sps:$4 sm:$0xff]   ;;  %v6012_v16 = vld [vmem:[#allocation5 + $0x9c] ss:$24 sps:$4 sm:$0xff]  }
  0x85   :  { %1963 = vmatpush1.bf16.msra.mxu0 %v5984_v3  ;;  %v5997_v17 = vld [vmem:[#allocation5 + $0xf4] ss:$24 sps:$4 sm:$0xff]   ;;  %v6014_v18 = vld [vmem:[#allocation5 + $0x98] ss:$24 sps:$4 sm:$0xff]   ;;  %v6003_v21 = vld [vmem:[#allocation5 + $0x124] ss:$24 sps:$4 sm:$0xff]  }
  0x86   :  { %1964 = vmatprep.subr.bf16.mxu0 %v5985_v4  ;;  %v5999_v19 = vld [vmem:[#allocation5 + $0xf0] ss:$24 sps:$4 sm:$0xff]   ;;  %v6018_v20 = vld [vmem:[#allocation5 + $0xcc] ss:$24 sps:$4 sm:$0xff]   ;;  %v6005_v23 = vld [vmem:[#allocation5 + $0x120] ss:$24 sps:$4 sm:$0xff]  }
  0x87   :  { %2135 = vmatpush1.bf16.msra.mxu1 %v6002_v10  ;;  %v6020_v22 = vld [vmem:[#allocation5 + $0xc8] ss:$24 sps:$4 sm:$0xff]   ;;  %v6024_v24 = vld [vmem:[#allocation5 + $0xfc] ss:$24 sps:$4 sm:$0xff]   ;;  %v6026_v26 = vld [vmem:[#allocation5 + $0xf8] ss:$24 sps:$4 sm:$0xff]  }
  0x88   :  { %2136 = vmatprep.subr.bf16.mxu1 %v6006_v13  ;;  %v6009_v25 = vld [vmem:[#allocation5 + $0x154] ss:$24 sps:$4 sm:$0xff]   ;;  %v6011_v27 = vld [vmem:[#allocation5 + $0x150] ss:$24 sps:$4 sm:$0xff]   ;;  %v6015_v29 = vld [vmem:[#allocation5 + $0x184] ss:$24 sps:$4 sm:$0xff]  }
  0x89   :  { %1965 = vmatpush1.bf16.msra.mxu0 %v5987_v5  ;;  %v6030_v28 = vld [vmem:[#allocation5 + $0x12c] ss:$24 sps:$4 sm:$0xff]   ;;  %v6032_v30 = vld [vmem:[#allocation5 + $0x128] ss:$24 sps:$4 sm:$0xff]   ;;  %v6036_v32 = vld [vmem:[#allocation5 + $0x15c] ss:$24 sps:$4 sm:$0xff]  }
  0x8a   :  { %1966 = vmatprep.subr.bf16.mxu0 %v5988_v8  ;;  %v6017_v31 = vld [vmem:[#allocation5 + $0x180] ss:$24 sps:$4 sm:$0xff]   ;;  %v6021_v33 = vld [vmem:[#allocation5 + $0x1b4] ss:$24 sps:$4 sm:$0xff]   ;;  %v6023_v35 = vld [vmem:[#allocation5 + $0x1b0] ss:$24 sps:$4 sm:$0xff]  }
  0x8b   :  { %2137 = vmatpush1.bf16.msra.mxu1 %v6008_v14  ;;  %v6038_v34 = vld [vmem:[#allocation5 + $0x158] ss:$24 sps:$4 sm:$0xff]   ;;  %v6042_v36 = vld [vmem:[#allocation5 + $0x18c] ss:$24 sps:$4 sm:$0xff]   ;;  %v6044_v38 = vld [vmem:[#allocation5 + $0x188] ss:$24 sps:$4 sm:$0xff]  }
  0x8c   :  { %2138 = vmatprep.subr.bf16.mxu1 %v6012_v16  ;;  %v6027_v37 = vld [vmem:[#allocation5 + $0x1e4] ss:$24 sps:$4 sm:$0xff]   ;;  %v6063_v39 = vld [vmem:[#allocation2 + $0x4] ss:$28 sps:$4 sm:$0xff]   ;;  %v6029_v40 = vld [vmem:[#allocation5 + $0x1e0] ss:$24 sps:$4 sm:$0xff]  }
  0x8d   :  { %1967 = vmatpush1.bf16.msra.mxu0 %v5990_v11  ;;  %v6048_v41 = vld [vmem:[#allocation5 + $0x1bc] ss:$24 sps:$4 sm:$0xff]   ;;  %1992 = vmatprep.mubr.bf16.mxu0 %v6063_v39  ;;  %v6050_v43 = vld [vmem:[#allocation5 + $0x1b8] ss:$24 sps:$4 sm:$0xff]   ;;  %v6054_v45 = vld [vmem:[#allocation5 + $0x1ec] ss:$24 sps:$4 sm:$0xff]  }
  0x8e   :  { %1968 = vmatprep.subr.bf16.mxu0 %v5991_v12  ;;  %v6033_v42 = vld [vmem:[#allocation5 + $0x214] ss:$24 sps:$4 sm:$0xff]   ;;  %2164 = vmatprep.mubr.bf16.mxu1 %v6063_v39  ;;  %v6035_v44 = vld [vmem:[#allocation5 + $0x210] ss:$24 sps:$4 sm:$0xff]   ;;  %v6039_v46 = vld [vmem:[#allocation5 + $0x244] ss:$24 sps:$4 sm:$0xff]  }
  0x8f   :  { %2139 = vmatpush1.bf16.msra.mxu1 %v6014_v18  ;;  %v6056_v47 = vld [vmem:[#allocation5 + $0x1e8] ss:$24 sps:$4 sm:$0xff]   ;;  %v6060_v49 = vld [vmem:[#allocation5 + $0x21c] ss:$24 sps:$4 sm:$0xff]   ;;  %v6062_v51 = vld [vmem:[#allocation5 + $0x218] ss:$24 sps:$4 sm:$0xff]  }
  0x90   :  { %2140 = vmatprep.subr.bf16.mxu1 %v6018_v20  ;;  %v6041_v48 = vld [vmem:[#allocation5 + $0x240] ss:$24 sps:$4 sm:$0xff]   ;;  %v6045_v50 = vld [vmem:[#allocation5 + $0x274] ss:$24 sps:$4 sm:$0xff]   ;;  %v6047_v52 = vld [vmem:[#allocation5 + $0x270] ss:$24 sps:$4 sm:$0xff]  }
  0x91   :  { %1969 = vmatpush1.bf16.msra.mxu0 %v5993_v15  ;;  %v6069_v53 = vld [vmem:[#allocation5 + $0x24c] ss:$24 sps:$4 sm:$0xff]   ;;  %v6071_v55 = vld [vmem:[#allocation5 + $0x248] ss:$24 sps:$4 sm:$0xff]   ;;  %v6075_v57 = vld [vmem:[#allocation5 + $0x27c] ss:$24 sps:$4 sm:$0xff]  }
  0x92   :  { %1970 = vmatprep.subr.bf16.mxu0 %v5997_v17  ;;  %v6051_v54 = vld [vmem:[#allocation5 + $0x2a4] ss:$24 sps:$4 sm:$0xff]   ;;  %v6053_v56 = vld [vmem:[#allocation5 + $0x2a0] ss:$24 sps:$4 sm:$0xff]   ;;  %v6057_v58 = vld [vmem:[#allocation5 + $0x2d4] ss:$24 sps:$4 sm:$0xff]  }
  0x93   :  { %2141 = vmatpush1.bf16.msra.mxu1 %v6020_v22  ;;  %v6077_v59 = vld [vmem:[#allocation5 + $0x278] ss:$24 sps:$4 sm:$0xff]   ;;  %v6081_v61 = vld [vmem:[#allocation5 + $0x2ac] ss:$24 sps:$4 sm:$0xff]   ;;  %v6083_v0 = vld [vmem:[#allocation5 + $0x2a8] ss:$24 sps:$4 sm:$0xff]  }
  0x94   :  { %2142 = vmatprep.subr.bf16.mxu1 %v6024_v24  ;;  %v6059_v60 = vld [vmem:[#allocation5 + $0x2d0] ss:$24 sps:$4 sm:$0xff]   ;;  %v6067_v62 = vld [vmem:[#allocation5 + $0x304] ss:$24 sps:$4 sm:$0xff]   ;;  %v6065_v1 = vld [vmem:[#allocation5 + $0x300] ss:$24 sps:$4 sm:$0xff]  }
  0x95   :  { %1971 = vmatpush1.bf16.msra.mxu0 %v5999_v19  ;;  %v6068_v63 = vld [vmem:[#allocation2] ss:$28 sps:$4 sm:$0xff]   ;;  %v6087_v2 = vld [vmem:[#allocation5 + $0x2dc] ss:$24 sps:$4 sm:$0xff]   ;;  %v6089_v4 = vld [vmem:[#allocation5 + $0x2d8] ss:$24 sps:$4 sm:$0xff]  }
  0x96   :  { %1972 = vmatprep.subr.bf16.mxu0 %v6003_v21  ;;  %v6074_v3 = vld [vmem:[#allocation5 + $0x334] ss:$24 sps:$4 sm:$0xff]   ;;  %v6072_v5 = vld [vmem:[#allocation5 + $0x330] ss:$24 sps:$4 sm:$0xff]   ;;  %v6080_v7 = vld [vmem:[#allocation5 + $0x364] ss:$24 sps:$4 sm:$0xff]  }
  0x97   :  { %2143 = vmatpush1.bf16.msra.mxu1 %v6026_v26  ;;  %v6095_v6 = vld [vmem:[#allocation5 + $0x30c] ss:$24 sps:$4 sm:$0xff]   ;;  %v6093_v8 = vld [vmem:[#allocation5 + $0x308] ss:$24 sps:$4 sm:$0xff]   ;;  %v6101_v10 = vld [vmem:[#allocation5 + $0x33c] ss:$24 sps:$4 sm:$0xff]  }
  0x98   :  { %2144 = vmatprep.subr.bf16.mxu1 %v6030_v28  ;;  %v6078_v9 = vld [vmem:[#allocation5 + $0x360] ss:$24 sps:$4 sm:$0xff]   ;;  %v6086_v11 = vld [vmem:[#allocation5 + $0x394] ss:$24 sps:$4 sm:$0xff]   ;;  %v6084_v13 = vld [vmem:[#allocation5 + $0x390] ss:$24 sps:$4 sm:$0xff]  }
  0x99   :  { %1973 = vmatpush1.bf16.msra.mxu0 %v6005_v23  ;;  %v6099_v12 = vld [vmem:[#allocation5 + $0x338] ss:$24 sps:$4 sm:$0xff]   ;;  %v6107_v14 = vld [vmem:[#allocation5 + $0x36c] ss:$24 sps:$4 sm:$0xff]   ;;  %v6105_v16 = vld [vmem:[#allocation5 + $0x368] ss:$24 sps:$4 sm:$0xff]  }
  0x9a   :  { %1974 = vmatprep.subr.bf16.mxu0 %v6009_v25  ;;  %v6092_v15 = vld [vmem:[#allocation5 + $0x3c4] ss:$24 sps:$4 sm:$0xff]   ;;  %v6090_v17 = vld [vmem:[#allocation5 + $0x3c0] ss:$24 sps:$4 sm:$0xff]   ;;  %v6098_v19 = vld [vmem:[#allocation5 + $0x3f4] ss:$24 sps:$4 sm:$0xff]  }
  0x9b   :  { %2145 = vmatpush1.bf16.msra.mxu1 %v6032_v30  ;;  %v6113_v18 = vld [vmem:[#allocation5 + $0x39c] ss:$24 sps:$4 sm:$0xff]   ;;  %v6111_v20 = vld [vmem:[#allocation5 + $0x398] ss:$24 sps:$4 sm:$0xff]   ;;  %v6119_v23 = vld [vmem:[#allocation5 + $0x3cc] ss:$24 sps:$4 sm:$0xff]  }
  0x9c   :  { %2146 = vmatprep.subr.bf16.mxu1 %v6036_v32  ;;  %v6164_v21 = vld [vmem:[#allocation2 + $0xc] ss:$28 sps:$4 sm:$0xff]   ;;  %v6104_v24 = vld [vmem:[#allocation5 + $0x424] ss:$24 sps:$4 sm:$0xff]   ;;  %v6117_v25 = vld [vmem:[#allocation5 + $0x3c8] ss:$24 sps:$4 sm:$0xff]  }
  0x9d   :  { %1975 = vmatpush1.bf16.msra.mxu0 %v6011_v27  ;;  %v6096_v22 = vld [vmem:[#allocation5 + $0x3f0] ss:$24 sps:$4 sm:$0xff]   ;;  %v6102_v26 = vld [vmem:[#allocation5 + $0x420] ss:$24 sps:$4 sm:$0xff]   ;;  %v6125_v27 = vld [vmem:[#allocation5 + $0x3fc] ss:$24 sps:$4 sm:$0xff]  }
  0x9e   :  { %1976 = vmatprep.subr.bf16.mxu0 %v6015_v29  ;;  %v6110_v28 = vld [vmem:[#allocation5 + $0x454] ss:$24 sps:$4 sm:$0xff]   ;;  %v6123_v29 = vld [vmem:[#allocation5 + $0x3f8] ss:$24 sps:$4 sm:$0xff]   ;;  %v6116_v32 = vld [vmem:[#allocation5 + $0x484] ss:$24 sps:$4 sm:$0xff]  }
  0x9f   :  { %2147 = vmatpush1.bf16.msra.mxu1 %v6038_v34  ;;  %v6108_v30 = vld [vmem:[#allocation5 + $0x450] ss:$24 sps:$4 sm:$0xff]   ;;  %v6114_v34 = vld [vmem:[#allocation5 + $0x480] ss:$24 sps:$4 sm:$0xff]   ;;  %v6143_v39 = vld [vmem:[#allocation5 + $0x48c] ss:$24 sps:$4 sm:$0xff]  }
  0xa0   :  { %2148 = vmatprep.subr.bf16.mxu1 %v6042_v36  ;;  %v6122_v36 = vld [vmem:[#allocation5 + $0x4b4] ss:$24 sps:$4 sm:$0xff]   ;;  %vm1956_vm0 = vcmask 130048   ;;  %s7117_s6 = smov [#allocation14]  }
  0xa1   :  { %1977 = vmatpush1.bf16.msra.mxu0 %v6017_v31  ;;  %v6131_v31 = vld [vmem:[#allocation5 + $0x42c] ss:$24 sps:$4 sm:$0xff]   ;;  %s5156_s3 = sshll.u32 %s7117_s6, 4  ;;  %s5157_s3 = int_to_ptr.vmem [resolvable:$true] %s5156_s3 }
  0xa2   :  { %1978 = vmatprep.subr.bf16.mxu0 %v6021_v33  ;;  %v6129_v33 = vld [vmem:[#allocation5 + $0x428] ss:$24 sps:$4 sm:$0xff]   ;;  %s7071_s11 = scalar_lea.vmem %s5157_s3, 256  ;;  %p7076_p1 = scmp.lt.s32.totalorder %s5157_s3, %s5157_s3 }
  0xa3   :  { %2149 = vmatpush1.bf16.msra.mxu1 %v6044_v38  ;;  %v6120_v38 = vld [vmem:[#allocation5 + $0x4b0] ss:$24 sps:$4 sm:$0xff]   ;;  %p7072_p0 = scmp.ne.s32.totalorder %s5157_s3, %s7071_s11  ;;  %p7077_p2 = scmp.lt.s32.totalorder %s7071_s11, %s7071_s11 }
  0xa4   :  { %2150 = vmatprep.subr.bf16.mxu1 %v6048_v41  ;;  %v6141_v41 = vld [vmem:[#allocation5 + $0x488] ss:$24 sps:$4 sm:$0xff]  }
  0xa5   :  { %1979 = vmatpush1.bf16.msra.mxu0 %v6023_v35  ;;  %v6137_v35 = vld [vmem:[#allocation5 + $0x45c] ss:$24 sps:$4 sm:$0xff]   ;;  %p7078_p3 = por %p7077_p2, %p7076_p1 }
  0xa6   :  { %1980 = vmatprep.subr.bf16.mxu0 %v6027_v37  ;;  %v6135_v37 = vld [vmem:[#allocation5 + $0x458] ss:$24 sps:$4 sm:$0xff]  }
  0xa7   :  { %2151 = vmatpush1.bf16.msra.mxu1 %v6050_v43  ;;  %v6149_v43 = vld [vmem:[#allocation5 + $0x4bc] ss:$24 sps:$4 sm:$0xff]   ;;  %p7079_p4 = pnand %p7078_p3, %p7072_p0 }
  0xa8   :  { %2152 = vmatprep.subr.bf16.mxu1 %v6054_v45  ;;  %v6147_v45 = vld [vmem:[#allocation5 + $0x4b8] ss:$24 sps:$4 sm:$0xff]  }
  0xa9   :  { %1981 = vmatpush1.bf16.msra.mxu0 %v6029_v40  ;;  %v6128_v40 = vld [vmem:[#allocation5 + $0x4e4] ss:$24 sps:$4 sm:$0xff]  }
  0xaa   :  { %1982 = vmatprep.subr.bf16.mxu0 %v6033_v42  ;;  %v6126_v42 = vld [vmem:[#allocation5 + $0x4e0] ss:$24 sps:$4 sm:$0xff]  }
  0xab   :  { %2153 = vmatpush1.bf16.msra.mxu1 %v6056_v47  ;;  %v6155_v47 = vld [vmem:[#allocation5 + $0x4ec] ss:$24 sps:$4 sm:$0xff]  }
  0xac   :  { %2154 = vmatprep.subr.bf16.mxu1 %v6060_v49  ;;  %v6153_v49 = vld [vmem:[#allocation5 + $0x4e8] ss:$24 sps:$4 sm:$0xff]  }
  0xad   :  { %1983 = vmatpush1.bf16.msra.mxu0 %v6035_v44  ;;  %v6134_v44 = vld [vmem:[#allocation5 + $0x514] ss:$24 sps:$4 sm:$0xff]  }
  0xae   :  { %1984 = vmatprep.subr.bf16.mxu0 %v6039_v46  ;;  %v6132_v46 = vld [vmem:[#allocation5 + $0x510] ss:$24 sps:$4 sm:$0xff]  }
  0xaf   :  { %2155 = vmatpush1.bf16.msra.mxu1 %v6062_v51  ;;  %v6161_v51 = vld [vmem:[#allocation5 + $0x51c] ss:$24 sps:$4 sm:$0xff]  }
  0xb0   :  { %2156 = vmatprep.subr.bf16.mxu1 %v6069_v53  ;;  %v6159_v53 = vld [vmem:[#allocation5 + $0x518] ss:$24 sps:$4 sm:$0xff]  }
  0xb1   :  { %1985 = vmatpush1.bf16.msra.mxu0 %v6041_v48  ;;  %v6140_v48 = vld [vmem:[#allocation5 + $0x544] ss:$24 sps:$4 sm:$0xff]  }
  0xb2   :  { %1986 = vmatprep.subr.bf16.mxu0 %v6045_v50  ;;  %v6138_v50 = vld [vmem:[#allocation5 + $0x540] ss:$24 sps:$4 sm:$0xff]  }
  0xb3   :  { %2157 = vmatpush1.bf16.msra.mxu1 %v6071_v55  ;;  %v6170_v55 = vld [vmem:[#allocation5 + $0x54c] ss:$24 sps:$4 sm:$0xff]  }
  0xb4   :  { %2158 = vmatprep.subr.bf16.mxu1 %v6075_v57  ;;  %v6168_v57 = vld [vmem:[#allocation5 + $0x548] ss:$24 sps:$4 sm:$0xff]  }
  0xb5   :  { %1987 = vmatpush1.bf16.msra.mxu0 %v6047_v52  ;;  %v6146_v52 = vld [vmem:[#allocation5 + $0x574] ss:$24 sps:$4 sm:$0xff]  }
  0xb6   :  { %1988 = vmatprep.subr.bf16.mxu0 %v6051_v54  ;;  %v6144_v54 = vld [vmem:[#allocation5 + $0x570] ss:$24 sps:$4 sm:$0xff]  }
  0xb7   :  { %2159 = vmatpush1.bf16.msra.mxu1 %v6077_v59  ;;  %v6176_v59 = vld [vmem:[#allocation5 + $0x57c] ss:$24 sps:$4 sm:$0xff]  }
  0xb8   :  { %2160 = vmatprep.subr.bf16.mxu1 %v6081_v61  ;;  %v6174_v61 = vld [vmem:[#allocation5 + $0x578] ss:$24 sps:$4 sm:$0xff]  }
  0xb9   :  { %1989 = vmatpush1.bf16.msra.mxu0 %v6053_v56  ;;  %v6152_v56 = vld [vmem:[#allocation5 + $0x5a4] ss:$24 sps:$4 sm:$0xff]  }
  0xba   :  { %1990 = vmatprep.subr.bf16.mxu0 %v6057_v58  ;;  %v6150_v58 = vld [vmem:[#allocation5 + $0x5a0] ss:$24 sps:$4 sm:$0xff]  }
  0xbb   :  { %2161 = vmatpush1.bf16.msra.mxu1 %v6083_v0  ;;  %v6167_v0 = vld [vmem:[#allocation5 + $0x604] ss:$24 sps:$4 sm:$0xff]  }
  0xbc   :  { %2162 = vmatprep.subr.bf16.mxu1 %v6087_v2  ;;  %v6165_v2 = vld [vmem:[#allocation5 + $0x600] ss:$24 sps:$4 sm:$0xff]  }
  0xbd   :  { %1991 = vmatpush1.bf16.msra.mxu0 %v6059_v60  ;;  %v6158_v60 = vld [vmem:[#allocation5 + $0x5d4] ss:$24 sps:$4 sm:$0xff]  }
  0xbe   :  { %2003 = vmatprep.subr.bf16.mxu0 %v6067_v62  ;;  %v6156_v62 = vld [vmem:[#allocation5 + $0x5d0] ss:$24 sps:$4 sm:$0xff]  }
  0xbf   :  { %2163 = vmatpush1.bf16.msra.mxu1 %v6089_v4  ;;  %v6173_v4 = vld [vmem:[#allocation5 + $0x634] ss:$24 sps:$4 sm:$0xff]  }
  0xc0   :  { %1993 = vmatmul.mubr.bf16.vlgmr.msra.gmra.mrb[0].mxu0 %v6068_v63  ;;  %2175 = vmatprep.subr.bf16.mxu1 %v6095_v6  ;;  %v6263_v6 = vld [vmem:[#allocation2 + $0x14] ss:$28 sps:$4 sm:$0xff]  }
  0xc1   :  { %2004 = vmatpush1.bf16.msra.mxu0 %v6065_v1  ;;  %2035 = vmatprep.mubr.bf16.mxu0 %v6164_v21  ;;  %v6162_v1 = vld [vmem:[#allocation2 + $0x8] ss:$28 sps:$4 sm:$0xff]  }
  0xc2   :  { %2005 = vmatprep.subr.bf16.mxu0 %v6074_v3  ;;  %2165 = vmatmul.mubr.bf16.vlgmr.msra.gmra.mrb[0].mxu1 %v6068_v63  ;;  %v6182_v63 = vld [vmem:[#allocation5 + $0x5ac] ss:$24 sps:$4 sm:$0xff]   ;;  %v6180_v3 = vld [vmem:[#allocation5 + $0x5a8] ss:$24 sps:$4 sm:$0xff]  }
  0xc3   :  { %2176 = vmatpush1.bf16.msra.mxu1 %v6093_v8  ;;  %2207 = vmatprep.mubr.bf16.mxu1 %v6164_v21  ;;  %v6171_v8 = vld [vmem:[#allocation5 + $0x630] ss:$24 sps:$4 sm:$0xff]   ;;  %v6212_v21 = vld [vmem:[#allocation5 + $0x69c] ss:$24 sps:$4 sm:$0xff]  }
  0xc4   :  { %2177 = vmatprep.subr.bf16.mxu1 %v6101_v10  ;;  %v6179_v10 = vld [vmem:[#allocation5 + $0x664] ss:$24 sps:$4 sm:$0xff]  }
  0xc5   :  { %2006 = vmatpush1.bf16.msra.mxu0 %v6072_v5  ;;  %v6188_v5 = vld [vmem:[#allocation5 + $0x5dc] ss:$24 sps:$4 sm:$0xff]  }
  0xc6   :  { %2007 = vmatprep.subr.bf16.mxu0 %v6080_v7  ;;  %v6186_v7 = vld [vmem:[#allocation5 + $0x5d8] ss:$24 sps:$4 sm:$0xff]  }
  0xc7   :  { %2178 = vmatpush1.bf16.msra.mxu1 %v6099_v12  ;;  %v6177_v12 = vld [vmem:[#allocation5 + $0x660] ss:$24 sps:$4 sm:$0xff]  }
  0xc8   :  { %2179 = vmatprep.subr.bf16.mxu1 %v6107_v14  ;;  %v6185_v14 = vld [vmem:[#allocation5 + $0x694] ss:$24 sps:$4 sm:$0xff]  }
  0xc9   :  { %2008 = vmatpush1.bf16.msra.mxu0 %v6078_v9  ;;  %v6194_v9 = vld [vmem:[#allocation5 + $0x60c] ss:$24 sps:$4 sm:$0xff]  }
  0xca   :  { %2009 = vmatprep.subr.bf16.mxu0 %v6086_v11  ;;  %v6192_v11 = vld [vmem:[#allocation5 + $0x608] ss:$24 sps:$4 sm:$0xff]  }
  0xcb   :  { %2180 = vmatpush1.bf16.msra.mxu1 %v6105_v16  ;;  %v6183_v16 = vld [vmem:[#allocation5 + $0x690] ss:$24 sps:$4 sm:$0xff]  }
  0xcc   :  { %2181 = vmatprep.subr.bf16.mxu1 %v6113_v18  ;;  %v6191_v18 = vld [vmem:[#allocation5 + $0x6c4] ss:$24 sps:$4 sm:$0xff]  }
  0xcd   :  { %2010 = vmatpush1.bf16.msra.mxu0 %v6084_v13  ;;  %v6200_v13 = vld [vmem:[#allocation5 + $0x63c] ss:$24 sps:$4 sm:$0xff]  }
  0xce   :  { %2011 = vmatprep.subr.bf16.mxu0 %v6092_v15  ;;  %v6198_v15 = vld [vmem:[#allocation5 + $0x638] ss:$24 sps:$4 sm:$0xff]  }
  0xcf   :  { %2182 = vmatpush1.bf16.msra.mxu1 %v6111_v20  ;;  %v6189_v20 = vld [vmem:[#allocation5 + $0x6c0] ss:$24 sps:$4 sm:$0xff]  }
  0xd0   :  { %2183 = vmatprep.subr.bf16.mxu1 %v6119_v23  ;;  %v6210_v23 = vld [vmem:[#allocation5 + $0x698] ss:$24 sps:$4 sm:$0xff]  }
  0xd1   :  { %2012 = vmatpush1.bf16.msra.mxu0 %v6090_v17  ;;  %v6206_v17 = vld [vmem:[#allocation5 + $0x66c] ss:$24 sps:$4 sm:$0xff]  }
  0xd2   :  { %2013 = vmatprep.subr.bf16.mxu0 %v6098_v19  ;;  %v6204_v19 = vld [vmem:[#allocation5 + $0x668] ss:$24 sps:$4 sm:$0xff]  }
  0xd3   :  { %2184 = vmatpush1.bf16.msra.mxu1 %v6117_v25  ;;  %v6218_v25 = vld [vmem:[#allocation5 + $0x6cc] ss:$24 sps:$4 sm:$0xff]  }
  0xd4   :  { %2185 = vmatprep.subr.bf16.mxu1 %v6125_v27  ;;  %v6216_v27 = vld [vmem:[#allocation5 + $0x6c8] ss:$24 sps:$4 sm:$0xff]  }
  0xd5   :  { %2014 = vmatpush1.bf16.msra.mxu0 %v6096_v22  ;;  %v6197_v22 = vld [vmem:[#allocation5 + $0x6f4] ss:$24 sps:$4 sm:$0xff]  }
  0xd6   :  { %2015 = vmatprep.subr.bf16.mxu0 %v6104_v24  ;;  %v6195_v24 = vld [vmem:[#allocation5 + $0x6f0] ss:$24 sps:$4 sm:$0xff]  }
  0xd7   :  { %2186 = vmatpush1.bf16.msra.mxu1 %v6123_v29  ;;  %v6224_v29 = vld [vmem:[#allocation5 + $0x6fc] ss:$24 sps:$4 sm:$0xff]  }
  0xd8   :  { %2187 = vmatprep.subr.bf16.mxu1 %v6131_v31  ;;  %v6222_v31 = vld [vmem:[#allocation5 + $0x6f8] ss:$24 sps:$4 sm:$0xff]  }
  0xd9   :  { %2016 = vmatpush1.bf16.msra.mxu0 %v6102_v26  ;;  %v6203_v26 = vld [vmem:[#allocation5 + $0x724] ss:$24 sps:$4 sm:$0xff]  }
  0xda   :  { %2017 = vmatprep.subr.bf16.mxu0 %v6110_v28  ;;  %v6201_v28 = vld [vmem:[#allocation5 + $0x720] ss:$24 sps:$4 sm:$0xff]  }
  0xdb   :  { %2188 = vmatpush1.bf16.msra.mxu1 %v6129_v33  ;;  %v6230_v33 = vld [vmem:[#allocation5 + $0x72c] ss:$24 sps:$4 sm:$0xff]  }
  0xdc   :  { %2189 = vmatprep.subr.bf16.mxu1 %v6137_v35  ;;  %v6228_v35 = vld [vmem:[#allocation5 + $0x728] ss:$24 sps:$4 sm:$0xff]  }
  0xdd   :  { %2018 = vmatpush1.bf16.msra.mxu0 %v6108_v30  ;;  %v6209_v30 = vld [vmem:[#allocation5 + $0x754] ss:$24 sps:$4 sm:$0xff]  }
  0xde   :  { %2019 = vmatprep.subr.bf16.mxu0 %v6116_v32  ;;  %v6207_v32 = vld [vmem:[#allocation5 + $0x750] ss:$24 sps:$4 sm:$0xff]  }
  0xdf   :  { %2190 = vmatpush1.bf16.msra.mxu1 %v6135_v37  ;;  %v6236_v37 = vld [vmem:[#allocation5 + $0x75c] ss:$24 sps:$4 sm:$0xff]  }
  0xe0   :  { %2191 = vmatprep.subr.bf16.mxu1 %v6143_v39  ;;  %v6219_v39 = vld [vmem:[#allocation5 + $0x7b0] ss:$24 sps:$4 sm:$0xff]  }
  0xe1   :  { %2020 = vmatpush1.bf16.msra.mxu0 %v6114_v34  ;;  %v6215_v34 = vld [vmem:[#allocation5 + $0x784] ss:$24 sps:$4 sm:$0xff]  }
  0xe2   :  { %2021 = vmatprep.subr.bf16.mxu0 %v6122_v36  ;;  %v6213_v36 = vld [vmem:[#allocation5 + $0x780] ss:$24 sps:$4 sm:$0xff]  }
  0xe3   :  { %2192 = vmatpush1.bf16.msra.mxu1 %v6141_v41  ;;  %v6227_v41 = vld [vmem:[#allocation5 + $0x7e4] ss:$24 sps:$4 sm:$0xff]  }
  0xe4   :  { %2193 = vmatprep.subr.bf16.mxu1 %v6149_v43  ;;  %v6240_v43 = vld [vmem:[#allocation5 + $0x788] ss:$24 sps:$4 sm:$0xff]  }
  0xe5   :  { %2022 = vmatpush1.bf16.msra.mxu0 %v6120_v38  ;;  %v6221_v38 = vld [vmem:[#allocation5 + $0x7b4] ss:$24 sps:$4 sm:$0xff]  }
  0xe6   :  { %2023 = vmatprep.subr.bf16.mxu0 %v6128_v40  ;;  %v6234_v40 = vld [vmem:[#allocation5 + $0x758] ss:$24 sps:$4 sm:$0xff]  }
  0xe7   :  { %2194 = vmatpush1.bf16.msra.mxu1 %v6147_v45  ;;  %v6233_v45 = vld [vmem:[#allocation5 + $0x814] ss:$24 sps:$4 sm:$0xff]  }
  0xe8   :  { %2195 = vmatprep.subr.bf16.mxu1 %v6155_v47  ;;  %v6246_v47 = vld [vmem:[#allocation5 + $0x7b8] ss:$24 sps:$4 sm:$0xff]  }
  0xe9   :  { %2024 = vmatpush1.bf16.msra.mxu0 %v6126_v42  ;;  %v6242_v42 = vld [vmem:[#allocation5 + $0x78c] ss:$24 sps:$4 sm:$0xff]  }
  0xea   :  { %2025 = vmatprep.subr.bf16.mxu0 %v6134_v44  ;;  %v6225_v44 = vld [vmem:[#allocation5 + $0x7e0] ss:$24 sps:$4 sm:$0xff]  }
  0xeb   :  { %2196 = vmatpush1.bf16.msra.mxu1 %v6153_v49  ;;  %v6239_v49 = vld [vmem:[#allocation5 + $0x844] ss:$24 sps:$4 sm:$0xff]  }
  0xec   :  { %2197 = vmatprep.subr.bf16.mxu1 %v6161_v51  ;;  %v6252_v51 = vld [vmem:[#allocation5 + $0x7e8] ss:$24 sps:$4 sm:$0xff]  }
  0xed   :  { %2026 = vmatpush1.bf16.msra.mxu0 %v6132_v46  ;;  %v6248_v46 = vld [vmem:[#allocation5 + $0x7bc] ss:$24 sps:$4 sm:$0xff]  }
  0xee   :  { %2027 = vmatprep.subr.bf16.mxu0 %v6140_v48  ;;  %v6231_v48 = vld [vmem:[#allocation5 + $0x810] ss:$24 sps:$4 sm:$0xff]  }
  0xef   :  { %2198 = vmatpush1.bf16.msra.mxu1 %v6159_v53  ;;  %v6245_v53 = vld [vmem:[#allocation5 + $0x874] ss:$24 sps:$4 sm:$0xff]  }
  0xf0   :  { %2199 = vmatprep.subr.bf16.mxu1 %v6170_v55  ;;  %v6258_v55 = vld [vmem:[#allocation5 + $0x818] ss:$24 sps:$4 sm:$0xff]  }
  0xf1   :  { %2028 = vmatpush1.bf16.msra.mxu0 %v6138_v50  ;;  %v6254_v50 = vld [vmem:[#allocation5 + $0x7ec] ss:$24 sps:$4 sm:$0xff]  }
  0xf2   :  { %2029 = vmatprep.subr.bf16.mxu0 %v6146_v52  ;;  %v6237_v52 = vld [vmem:[#allocation5 + $0x840] ss:$24 sps:$4 sm:$0xff]  }
  0xf3   :  { %2200 = vmatpush1.bf16.msra.mxu1 %v6168_v57  ;;  %v6251_v57 = vld [vmem:[#allocation5 + $0x8a4] ss:$24 sps:$4 sm:$0xff]  }
  0xf4   :  { %2201 = vmatprep.subr.bf16.mxu1 %v6176_v59  ;;  %v6267_v59 = vld [vmem:[#allocation5 + $0x848] ss:$24 sps:$4 sm:$0xff]  }
  0xf5   :  { %2030 = vmatpush1.bf16.msra.mxu0 %v6144_v54  ;;  %v6260_v54 = vld [vmem:[#allocation5 + $0x81c] ss:$24 sps:$4 sm:$0xff]  }
  0xf6   :  { %2031 = vmatprep.subr.bf16.mxu0 %v6152_v56  ;;  %v6243_v56 = vld [vmem:[#allocation5 + $0x870] ss:$24 sps:$4 sm:$0xff]  }
  0xf7   :  { %2202 = vmatpush1.bf16.msra.mxu1 %v6174_v61  ;;  %v6257_v61 = vld [vmem:[#allocation5 + $0x8d4] ss:$24 sps:$4 sm:$0xff]  }
  0xf8   :  { %2203 = vmatprep.subr.bf16.mxu1 %v6182_v63  ;;  %v6270_v63 = vld [vmem:[#allocation5 + $0x878] ss:$24 sps:$4 sm:$0xff]  }
  0xf9   :  { %2032 = vmatpush1.bf16.msra.mxu0 %v6150_v58  ;;  %v6269_v58 = vld [vmem:[#allocation5 + $0x84c] ss:$24 sps:$4 sm:$0xff]  }
  0xfa   :  { %2033 = vmatprep.subr.bf16.mxu0 %v6158_v60  ;;  %v6249_v60 = vld [vmem:[#allocation5 + $0x8a0] ss:$24 sps:$4 sm:$0xff]  }
  0xfb   :  { %2204 = vmatpush1.bf16.msra.mxu1 %v6180_v3  ;;  %v6261_v3 = vld [vmem:[#allocation2 + $0x10] ss:$28 sps:$4 sm:$0xff]  }
  0xfc   :  { %2205 = vmatprep.subr.bf16.mxu1 %v6188_v5  ;;  %v6264_v5 = vld [vmem:[#allocation5 + $0x900] ss:$24 sps:$4 sm:$0xff]  }
  0xfd   :  { %2034 = vmatpush1.bf16.msra.mxu0 %v6156_v62  ;;  %v6272_v62 = vld [vmem:[#allocation5 + $0x87c] ss:$24 sps:$4 sm:$0xff]  }
  0xfe   :  { %2046 = vmatprep.subr.bf16.mxu0 %v6167_v0  ;;  %v6255_v0 = vld [vmem:[#allocation5 + $0x8d0] ss:$24 sps:$4 sm:$0xff]  }
  0xff   :  { %2206 = vmatpush1.bf16.msra.mxu1 %v6186_v7  ;;  %v6282_v7 = vld [vmem:[#allocation5 + $0x8dc] ss:$24 sps:$4 sm:$0xff]  }
 0x100   :  { %2036 = vmatmul.mubr.bf16.vlgmr.msra.gmra.mrb[0].mxu0 %v6162_v1  ;;  %2218 = vmatprep.subr.bf16.mxu1 %v6194_v9  ;;  %v7116_v9 = vmov 0  }
 0x101   :  { %2047 = vmatpush1.bf16.msra.mxu0 %v6165_v2  ;;  %2078 = vmatprep.mubr.bf16.mxu0 %v6263_v6  ;;  %v6275_v2 = vld [vmem:[#allocation5 + $0x8ac] ss:$24 sps:$4 sm:$0xff]  }
 0x102   :  { %2048 = vmatprep.subr.bf16.mxu0 %v6173_v4  ;;  %2208 = vmatmul.mubr.bf16.vlgmr.msra.gmra.mrb[0].mxu1 %v6162_v1  ;;  %v6266_v1 = vld [vmem:[#allocation5 + $0x904] ss:$24 sps:$4 sm:$0xff]   ;;  %v6273_v4 = vld [vmem:[#allocation5 + $0x8a8] ss:$24 sps:$4 sm:$0xff]  }
 0x103   :  { %2219 = vmatpush1.bf16.msra.mxu1 %v6192_v11  ;;  %2250 = vmatprep.mubr.bf16.mxu1 %v6263_v6  ;;  %v6279_v6 = vld [vmem:[#allocation5 + $0x90c] ss:$24 sps:$4 sm:$0xff]   ;;  %v6277_v11 = vld [vmem:[#allocation5 + $0x908] ss:$24 sps:$4 sm:$0xff]  }
 0x104   :  { %2220 = vmatprep.subr.bf16.mxu1 %v6200_v13  ;;  %v6283_v13 = vld [vmem:[#allocation5 + $0x10] ss:$24 sps:$4 sm:$0xff]  }
 0x105   :  { %2049 = vmatpush1.bf16.msra.mxu0 %v6171_v8  ;;  %v6280_v8 = vld [vmem:[#allocation5 + $0x8d8] ss:$24 sps:$4 sm:$0xff]  }
 0x106   :  { %2050 = vmatprep.subr.bf16.mxu0 %v6179_v10  ;;  %v6276_v10 = vld [vmem:[#allocation2 + $0x18] ss:$28 sps:$4 sm:$0xff]  }
 0x107   :  { %2221 = vmatpush1.bf16.msra.mxu1 %v6198_v15  ;;  %v6286_v15 = vld [vmem:[#allocation5 + $0x40] ss:$24 sps:$4 sm:$0xff]  }
 0x108   :  { %2222 = vmatprep.subr.bf16.mxu1 %v6206_v17  ;;  %v6910_v17 = vld [vmem:[#allocation2 + $0x4] ss:$28 sps:$4 sm:$0xff]  }
 0x109   :  { %2051 = vmatpush1.bf16.msra.mxu0 %v6177_v12  ;;  %v6285_v12 = vld [vmem:[#allocation5 + $0x14] ss:$24 sps:$4 sm:$0xff]  }
 0x10a   :  { %2052 = vmatprep.subr.bf16.mxu0 %v6185_v14  ;;  %v6288_v14 = vld [vmem:[#allocation5 + $0x44] ss:$24 sps:$4 sm:$0xff]  }
 0x10b   :  { %2223 = vmatpush1.bf16.msra.mxu1 %v6204_v19  ;;  %v6294_v19 = vld [vmem:[#allocation5 + $0xa4] ss:$24 sps:$4 sm:$0xff]  }
 0x10c   :  { %2224 = vmatprep.subr.bf16.mxu1 %v6212_v21  ;;  %v6297_v21 = vld [vmem:[#allocation5 + $0xd4] ss:$24 sps:$4 sm:$0xff]  }
 0x10d   :  { %2053 = vmatpush1.bf16.msra.mxu0 %v6183_v16  ;;  %v6291_v16 = vld [vmem:[#allocation5 + $0x74] ss:$24 sps:$4 sm:$0xff]  }
 0x10e   :  { %2054 = vmatprep.subr.bf16.mxu0 %v6191_v18  ;;  %v6289_v18 = vld [vmem:[#allocation5 + $0x70] ss:$24 sps:$4 sm:$0xff]  }
 0x10f   :  { %2225 = vmatpush1.bf16.msra.mxu1 %v6210_v23  ;;  %v6300_v23 = vld [vmem:[#allocation5 + $0x104] ss:$24 sps:$4 sm:$0xff]  }
 0x110   :  { %2226 = vmatprep.subr.bf16.mxu1 %v6218_v25  ;;  %v6303_v25 = vld [vmem:[#allocation5 + $0x134] ss:$24 sps:$4 sm:$0xff]  }
 0x111   :  { %2055 = vmatpush1.bf16.msra.mxu0 %v6189_v20  ;;  %v6292_v20 = vld [vmem:[#allocation5 + $0xa0] ss:$24 sps:$4 sm:$0xff]  }
 0x112   :  { %2056 = vmatprep.subr.bf16.mxu0 %v6197_v22  ;;  %v6295_v22 = vld [vmem:[#allocation5 + $0xd0] ss:$24 sps:$4 sm:$0xff]  }
 0x113   :  { %2227 = vmatpush1.bf16.msra.mxu1 %v6216_v27  ;;  %v6399_v27 = vld [vmem:[#allocation8 + $0x4] ss:$24 sps:$4 sm:$0xff]  }
 0x114   :  { %2228 = vmatprep.subr.bf16.mxu1 %v6224_v29  ;;  %v6306_v29 = vld [vmem:[#allocation5 + $0x164] ss:$24 sps:$4 sm:$0xff]  }
 0x115   :  { %2057 = vmatpush1.bf16.msra.mxu0 %v6195_v24  ;;  %v6298_v24 = vld [vmem:[#allocation5 + $0x100] ss:$24 sps:$4 sm:$0xff]  }
 0x116   :  { %2058 = vmatprep.subr.bf16.mxu0 %v6203_v26  ;;  %v6397_v26 = vld [vmem:[#allocation8] ss:$24 sps:$4 sm:$0xff]  }
 0x117   :  { %2229 = vmatpush1.bf16.msra.mxu1 %v6222_v31  ;;  %v6405_v31 = vld [vmem:[#allocation8 + $0x34] ss:$24 sps:$4 sm:$0xff]  }
 0x118   :  { %2230 = vmatprep.subr.bf16.mxu1 %v6230_v33  ;;  %v6309_v33 = vld [vmem:[#allocation5 + $0x194] ss:$24 sps:$4 sm:$0xff]  }
 0x119   :  { %2059 = vmatpush1.bf16.msra.mxu0 %v6201_v28  ;;  %v6301_v28 = vld [vmem:[#allocation5 + $0x130] ss:$24 sps:$4 sm:$0xff]  }
 0x11a   :  { %2060 = vmatprep.subr.bf16.mxu0 %v6209_v30  ;;  %v6403_v30 = vld [vmem:[#allocation8 + $0x30] ss:$24 sps:$4 sm:$0xff]  }
 0x11b   :  { %2231 = vmatpush1.bf16.msra.mxu1 %v6228_v35  ;;  %v6411_v35 = vld [vmem:[#allocation8 + $0x64] ss:$24 sps:$4 sm:$0xff]  }
 0x11c   :  { %2232 = vmatprep.subr.bf16.mxu1 %v6236_v37  ;;  %v6312_v37 = vld [vmem:[#allocation5 + $0x1c4] ss:$24 sps:$4 sm:$0xff]  }
 0x11d   :  { %2061 = vmatpush1.bf16.msra.mxu0 %v6207_v32  ;;  %v6304_v32 = vld [vmem:[#allocation5 + $0x160] ss:$24 sps:$4 sm:$0xff]  }
 0x11e   :  { %2062 = vmatprep.subr.bf16.mxu0 %v6215_v34  ;;  %v6409_v34 = vld [vmem:[#allocation8 + $0x60] ss:$24 sps:$4 sm:$0xff]  }
 0x11f   :  { %2233 = vmatpush1.bf16.msra.mxu1 %v6234_v40  ;;  %v6310_v40 = vld [vmem:[#allocation5 + $0x1c0] ss:$24 sps:$4 sm:$0xff]  }
 0x120   :  { %2234 = vmatprep.subr.bf16.mxu1 %v6242_v42  ;;  %v6421_v42 = vld [vmem:[#allocation8 + $0xc0] ss:$24 sps:$4 sm:$0xff]  }
 0x121   :  { %2063 = vmatpush1.bf16.msra.mxu0 %v6213_v36  ;;  %v6307_v36 = vld [vmem:[#allocation5 + $0x190] ss:$24 sps:$4 sm:$0xff]  }
 0x122   :  { %2064 = vmatprep.subr.bf16.mxu0 %v6221_v38  ;;  %v6415_v38 = vld [vmem:[#allocation8 + $0x90] ss:$24 sps:$4 sm:$0xff]  }
 0x123   :  { %2235 = vmatpush1.bf16.msra.mxu1 %v6240_v43  ;;  %v6423_v43 = vld [vmem:[#allocation8 + $0xc4] ss:$24 sps:$4 sm:$0xff]  }
 0x124   :  { %2236 = vmatprep.subr.bf16.mxu1 %v6248_v46  ;;  %v6427_v46 = vld [vmem:[#allocation8 + $0xf0] ss:$24 sps:$4 sm:$0xff]  }
 0x125   :  { %2065 = vmatpush1.bf16.msra.mxu0 %v6219_v39  ;;  %v6417_v39 = vld [vmem:[#allocation8 + $0x94] ss:$24 sps:$4 sm:$0xff]  }
 0x126   :  { %2066 = vmatprep.subr.bf16.mxu0 %v6227_v41  ;;  %v6315_v41 = vld [vmem:[#allocation5 + $0x1f4] ss:$24 sps:$4 sm:$0xff]  }
 0x127   :  { %2237 = vmatpush1.bf16.msra.mxu1 %v6246_v47  ;;  %v6429_v47 = vld [vmem:[#allocation8 + $0xf4] ss:$24 sps:$4 sm:$0xff]  }
 0x128   :  { %2238 = vmatprep.subr.bf16.mxu1 %v6254_v50  ;;  %v6433_v50 = vld [vmem:[#allocation8 + $0x120] ss:$24 sps:$4 sm:$0xff]  }
 0x129   :  { %2067 = vmatpush1.bf16.msra.mxu0 %v6225_v44  ;;  %v6313_v44 = vld [vmem:[#allocation5 + $0x1f0] ss:$24 sps:$4 sm:$0xff]  }
 0x12a   :  { %2068 = vmatprep.subr.bf16.mxu0 %v6233_v45  ;;  %v6318_v45 = vld [vmem:[#allocation5 + $0x224] ss:$24 sps:$4 sm:$0xff]  }
 0x12b   :  { %2239 = vmatpush1.bf16.msra.mxu1 %v6252_v51  ;;  %v6435_v51 = vld [vmem:[#allocation8 + $0x124] ss:$24 sps:$4 sm:$0xff]  }
 0x12c   :  { %2240 = vmatprep.subr.bf16.mxu1 %v6260_v54  ;;  %v6439_v54 = vld [vmem:[#allocation8 + $0x150] ss:$24 sps:$4 sm:$0xff]  }
 0x12d   :  { %2069 = vmatpush1.bf16.msra.mxu0 %v6231_v48  ;;  %v6316_v48 = vld [vmem:[#allocation5 + $0x220] ss:$24 sps:$4 sm:$0xff]  }
 0x12e   :  { %2070 = vmatprep.subr.bf16.mxu0 %v6239_v49  ;;  %v6321_v49 = vld [vmem:[#allocation5 + $0x254] ss:$24 sps:$4 sm:$0xff]  }
 0x12f   :  { %2241 = vmatpush1.bf16.msra.mxu1 %v6258_v55  ;;  %v6441_v55 = vld [vmem:[#allocation8 + $0x154] ss:$24 sps:$4 sm:$0xff]  }
 0x130   :  { %2242 = vmatprep.subr.bf16.mxu1 %v6269_v58  ;;  %v6445_v58 = vld [vmem:[#allocation8 + $0x180] ss:$24 sps:$4 sm:$0xff]  }
 0x131   :  { %2071 = vmatpush1.bf16.msra.mxu0 %v6237_v52  ;;  %v6319_v52 = vld [vmem:[#allocation5 + $0x250] ss:$24 sps:$4 sm:$0xff]  }
 0x132   :  { %2072 = vmatprep.subr.bf16.mxu0 %v6245_v53  ;;  %v6324_v53 = vld [vmem:[#allocation5 + $0x284] ss:$24 sps:$4 sm:$0xff]  }
 0x133   :  { %2243 = vmatpush1.bf16.msra.mxu1 %v6267_v59  ;;  %v6447_v59 = vld [vmem:[#allocation8 + $0x184] ss:$24 sps:$4 sm:$0xff]  }
 0x134   :  { %2244 = vmatprep.subr.bf16.mxu1 %v6272_v62  ;;  %v6451_v62 = vld [vmem:[#allocation8 + $0x1b0] ss:$24 sps:$4 sm:$0xff]  }
 0x135   :  { %2073 = vmatpush1.bf16.msra.mxu0 %v6243_v56  ;;  %v6322_v56 = vld [vmem:[#allocation5 + $0x280] ss:$24 sps:$4 sm:$0xff]  }
 0x136   :  { %2074 = vmatprep.subr.bf16.mxu0 %v6251_v57  ;;  %v6327_v57 = vld [vmem:[#allocation5 + $0x2b4] ss:$24 sps:$4 sm:$0xff]  }
 0x137   :  { %2245 = vmatpush1.bf16.msra.mxu1 %v6270_v63  ;;  %v6453_v63 = vld [vmem:[#allocation8 + $0x1b4] ss:$24 sps:$4 sm:$0xff]  }
 0x138   :  { %2246 = vmatprep.subr.bf16.mxu1 %v6275_v2  ;;  %v6457_v2 = vld [vmem:[#allocation8 + $0x1e0] ss:$24 sps:$4 sm:$0xff]  }
 0x139   :  { %2075 = vmatpush1.bf16.msra.mxu0 %v6249_v60  ;;  %v6325_v60 = vld [vmem:[#allocation5 + $0x2b0] ss:$24 sps:$4 sm:$0xff]  }
 0x13a   :  { %2076 = vmatprep.subr.bf16.mxu0 %v6257_v61  ;;  %v6330_v61 = vld [vmem:[#allocation5 + $0x2e4] ss:$24 sps:$4 sm:$0xff]  }
 0x13b   :  { %2247 = vmatpush1.bf16.msra.mxu1 %v6273_v4  ;;  %v6331_v4 = vld [vmem:[#allocation5 + $0x310] ss:$24 sps:$4 sm:$0xff]  }
 0x13c   :  { %2248 = vmatprep.subr.bf16.mxu1 %v6282_v7  ;;  %v6463_v7 = vld [vmem:[#allocation8 + $0x210] ss:$24 sps:$4 sm:$0xff]  }
 0x13d   :  { %2077 = vmatpush1.bf16.msra.mxu0 %v6255_v0  ;;  %v6328_v0 = vld [vmem:[#allocation5 + $0x2e0] ss:$24 sps:$4 sm:$0xff]  }
 0x13e   :  { %2089 = vmatprep.subr.bf16.mxu0 %v6266_v1  ;;  %v6333_v1 = vld [vmem:[#allocation5 + $0x314] ss:$24 sps:$4 sm:$0xff]  }
 0x13f   :  { %2249 = vmatpush1.bf16.msra.mxu1 %v6280_v8  ;;  %v6911_v8 = vld [vmem:[#allocation2] ss:$28 sps:$4 sm:$0xff]  }
 0x140   :  { %2079 = vmatmul.mubr.bf16.vlgmr.msra.gmra.mrb[0].mxu0 %v6261_v3  ;;  %4242 = vmatprep.subr.bf16.mxu1 %v6399_v27  ;;  %v6346_v27 = vld [vmem:[#allocation5 + $0x400] ss:$24 sps:$4 sm:$0xff]  }
 0x141   :  { %2090 = vmatpush1.bf16.msra.mxu0 %v6264_v5  ;;  %2121 = vmatprep.mubr.bf16.mxu0 %v7116_v9  ;;  %v6336_v5 = vld [vmem:[#allocation5 + $0x344] ss:$24 sps:$4 sm:$0xff]  }
 0x142   :  { %2261 = vmatprep.subr.bf16.mxu0 %v6279_v6  ;;  %2251 = vmatmul.mubr.bf16.vlgmr.msra.gmra.mrb[0].mxu1 %v6261_v3  ;;  %v6459_v3 = vld [vmem:[#allocation8 + $0x1e4] ss:$24 sps:$4 sm:$0xff]   ;;  %v6465_v6 = vld [vmem:[#allocation8 + $0x214] ss:$24 sps:$4 sm:$0xff]  }
 0x143   :  { %4243 = vmatpush1.bf16.msra.mxu1 %v6397_v26  ;;  %v6481_v26 = vld [vmem:[#allocation8 + $0x2d0] ss:$24 sps:$4 sm:$0xff]  }
 0x144   :  { %4244 = vmatprep.subr.bf16.mxu1 %v6405_v31  ;;  %v6354_v31 = vld [vmem:[#allocation5 + $0x464] ss:$24 sps:$4 sm:$0xff]  }
 0x147   :  { %4245 = vmatpush1.bf16.msra.mxu1 %v6403_v30  ;;  %v6349_v30 = vld [vmem:[#allocation5 + $0x430] ss:$24 sps:$4 sm:$0xff]  }
 0x148   :  { %4246 = vmatprep.subr.bf16.mxu1 %v6411_v35  ;;  %v6360_v35 = vld [vmem:[#allocation5 + $0x4c4] ss:$24 sps:$4 sm:$0xff]  }
 0x14b   :  { %4247 = vmatpush1.bf16.msra.mxu1 %v6409_v34  ;;  %v6355_v34 = vld [vmem:[#allocation5 + $0x490] ss:$24 sps:$4 sm:$0xff]  }
 0x14c   :  { %5472 = vmatmul.mubr.msk.bf16.vlgmr.msra.gmra.mrb[0].mxu0 %vm1956_vm0, %v6276_v10  ;;  %4248 = vmatprep.subr.bf16.mxu1 %v6417_v39  ;;  %v6366_v39 = vld [vmem:[#allocation5 + $0x524] ss:$24 sps:$4 sm:$0xff]  }
 0x14d   :  { %2262 = vmatpush1.bf16.msra.mxu0 %v6277_v11  ;;  %2293 = vmatprep.mubr.bf16.mxu0 %v7116_v9  ;;  %v6912_v11 = vld [vmem:[#allocation2 + $0xc] ss:$28 sps:$4 sm:$0xff]  }
 0x14e   :  { %2304 = vmatprep.subr.bf16.mxu0 %v6285_v12  ;;  %v6468_v12 = vld [vmem:[#allocation8 + $0x244] ss:$24 sps:$4 sm:$0xff]  }
 0x14f   :  { %4249 = vmatpush1.bf16.msra.mxu1 %v6415_v38  ;;  %v6361_v38 = vld [vmem:[#allocation5 + $0x4f0] ss:$24 sps:$4 sm:$0xff]  }
 0x150   :  { %4250 = vmatprep.subr.bf16.mxu1 %v6423_v43  ;;  %v6372_v43 = vld [vmem:[#allocation5 + $0x584] ss:$24 sps:$4 sm:$0xff]  }
 0x153   :  { %4251 = vmatpush1.bf16.msra.mxu1 %v6421_v42  ;;  %v6367_v42 = vld [vmem:[#allocation5 + $0x550] ss:$24 sps:$4 sm:$0xff]  }
 0x154   :  { %5473 = vmatmul.mubr.msk.bf16.vlgmr.msra.gmra.mrb[4].mxu0 %vm1956_vm0, %v6276_v10  ;;  %4252 = vmatprep.subr.bf16.mxu1 %v6429_v47  ;;  %v6334_v10 = vld [vmem:[#allocation5 + $0x340] ss:$24 sps:$4 sm:$0xff]   ;;  %v6378_v47 = vld [vmem:[#allocation5 + $0x5e4] ss:$24 sps:$4 sm:$0xff]  }
 0x155   :  { %2305 = vmatpush1.bf16.msra.mxu0 %v6283_v13  ;;  %2336 = vmatprep.mubr.bf16.mxu0 %v6910_v17  ;;  %v6339_v13 = vld [vmem:[#allocation5 + $0x374] ss:$24 sps:$4 sm:$0xff]   ;;  %v6342_v17 = vld [vmem:[#allocation5 + $0x3a4] ss:$24 sps:$4 sm:$0xff]  }
 0x156   :  { %2306 = vmatprep.subr.bf16.mxu0 %v6288_v14  ;;  %v6466_v14 = vld [vmem:[#allocation8 + $0x240] ss:$24 sps:$4 sm:$0xff]  }
 0x157   :  { %4253 = vmatpush1.bf16.msra.mxu1 %v6427_v46  ;;  %v6373_v46 = vld [vmem:[#allocation5 + $0x5b0] ss:$24 sps:$4 sm:$0xff]  }
 0x158   :  { %4254 = vmatprep.subr.bf16.mxu1 %v6435_v51  ;;  %v6384_v51 = vld [vmem:[#allocation5 + $0x644] ss:$24 sps:$4 sm:$0xff]  }
 0x159   :  { %2307 = vmatpush1.bf16.msra.mxu0 %v6286_v15  ;;  %v6337_v15 = vld [vmem:[#allocation5 + $0x370] ss:$24 sps:$4 sm:$0xff]  }
 0x15a   :  { %2308 = vmatprep.subr.bf16.mxu0 %v6291_v16  ;;  %v6471_v16 = vld [vmem:[#allocation8 + $0x274] ss:$24 sps:$4 sm:$0xff]  }
 0x15b   :  { %4255 = vmatpush1.bf16.msra.mxu1 %v6433_v50  ;;  %v6379_v50 = vld [vmem:[#allocation5 + $0x610] ss:$24 sps:$4 sm:$0xff]  }
 0x15c   :  { %4256 = vmatprep.subr.bf16.mxu1 %v6441_v55  ;;  %v6387_v55 = vld [vmem:[#allocation5 + $0x674] ss:$24 sps:$4 sm:$0xff]  }
 0x15d   :  { %2309 = vmatpush1.bf16.msra.mxu0 %v6289_v18  ;;  %v6469_v18 = vld [vmem:[#allocation8 + $0x270] ss:$24 sps:$4 sm:$0xff]  }
 0x15e   :  { %2310 = vmatprep.subr.bf16.mxu0 %v6294_v19  ;;  %v6340_v19 = vld [vmem:[#allocation5 + $0x3a0] ss:$24 sps:$4 sm:$0xff]  }
 0x15f   :  { %4257 = vmatpush1.bf16.msra.mxu1 %v6439_v54  ;;  %v6914_v54 = vld [vmem:[#allocation2 + $0x14] ss:$28 sps:$4 sm:$0xff]  }
 0x160   :  { %4258 = vmatprep.subr.bf16.mxu1 %v6447_v59  ;;  %v6393_v59 = vld [vmem:[#allocation5 + $0x6d4] ss:$24 sps:$4 sm:$0xff]  }
 0x161   :  { %2311 = vmatpush1.bf16.msra.mxu0 %v6292_v20  ;;  %v6345_v20 = vld [vmem:[#allocation5 + $0x3d4] ss:$24 sps:$4 sm:$0xff]  }
 0x162   :  { %2312 = vmatprep.subr.bf16.mxu0 %v6297_v21  ;;  %v6477_v21 = vld [vmem:[#allocation8 + $0x2a4] ss:$24 sps:$4 sm:$0xff]  }
 0x163   :  { %4259 = vmatpush1.bf16.msra.mxu1 %v6445_v58  ;;  %v6388_v58 = vld [vmem:[#allocation5 + $0x6a0] ss:$24 sps:$4 sm:$0xff]  }
 0x164   :  { %4260 = vmatprep.subr.bf16.mxu1 %v6453_v63  ;;  %v6402_v63 = vld [vmem:[#allocation5 + $0x734] ss:$24 sps:$4 sm:$0xff]  }
 0x165   :  { %2313 = vmatpush1.bf16.msra.mxu0 %v6295_v22  ;;  %v6343_v22 = vld [vmem:[#allocation5 + $0x3d0] ss:$24 sps:$4 sm:$0xff]  }
 0x166   :  { %2314 = vmatprep.subr.bf16.mxu0 %v6300_v23  ;;  %v6475_v23 = vld [vmem:[#allocation8 + $0x2a0] ss:$24 sps:$4 sm:$0xff]  }
 0x167   :  { %4261 = vmatpush1.bf16.msra.mxu1 %v6451_v62  ;;  %v6394_v62 = vld [vmem:[#allocation5 + $0x700] ss:$24 sps:$4 sm:$0xff]  }
 0x168   :  { %4262 = vmatprep.subr.bf16.mxu1 %v6459_v3  ;;  %v6414_v3 = vld [vmem:[#allocation5 + $0x794] ss:$24 sps:$4 sm:$0xff]  }
 0x169   :  { %2315 = vmatpush1.bf16.msra.mxu0 %v6298_v24  ;;  %v6348_v24 = vld [vmem:[#allocation5 + $0x404] ss:$24 sps:$4 sm:$0xff]  }
 0x16a   :  { %2316 = vmatprep.subr.bf16.mxu0 %v6303_v25  ;;  %v6483_v25 = vld [vmem:[#allocation8 + $0x2d4] ss:$24 sps:$4 sm:$0xff]  }
 0x16b   :  { %4263 = vmatpush1.bf16.msra.mxu1 %v6457_v2  ;;  %v6406_v2 = vld [vmem:[#allocation5 + $0x760] ss:$24 sps:$4 sm:$0xff]  }
 0x16c   :  { %4264 = vmatprep.subr.bf16.mxu1 %v6465_v6  ;;  %v6418_v6 = vld [vmem:[#allocation5 + $0x7c0] ss:$24 sps:$4 sm:$0xff]  }
 0x16d   :  { %2317 = vmatpush1.bf16.msra.mxu0 %v6301_v28  ;;  %v6351_v28 = vld [vmem:[#allocation5 + $0x434] ss:$24 sps:$4 sm:$0xff]  }
 0x16e   :  { %2318 = vmatprep.subr.bf16.mxu0 %v6306_v29  ;;  %v6489_v29 = vld [vmem:[#allocation8 + $0x304] ss:$24 sps:$4 sm:$0xff]  }
 0x16f   :  { %4265 = vmatpush1.bf16.msra.mxu1 %v6463_v7  ;;  %v6426_v7 = vld [vmem:[#allocation5 + $0x7f4] ss:$24 sps:$4 sm:$0xff]  }
 0x170   :  { %4266 = vmatprep.subr.bf16.mxu1 %v6468_v12  ;;  %v6438_v12 = vld [vmem:[#allocation5 + $0x854] ss:$24 sps:$4 sm:$0xff]  }
 0x171   :  { %2319 = vmatpush1.bf16.msra.mxu0 %v6304_v32  ;;  %v6352_v32 = vld [vmem:[#allocation5 + $0x460] ss:$24 sps:$4 sm:$0xff]  }
 0x172   :  { %2320 = vmatprep.subr.bf16.mxu0 %v6309_v33  ;;  %v6357_v33 = vld [vmem:[#allocation5 + $0x494] ss:$24 sps:$4 sm:$0xff]  }
 0x173   :  { %4267 = vmatpush1.bf16.msra.mxu1 %v6466_v14  ;;  %v6444_v14 = vld [vmem:[#allocation5 + $0x884] ss:$24 sps:$4 sm:$0xff]  }
 0x174   :  { %4268 = vmatprep.subr.bf16.mxu1 %v6471_v16  ;;  %v6450_v16 = vld [vmem:[#allocation5 + $0x8b4] ss:$24 sps:$4 sm:$0xff]  }
 0x175   :  { %2321 = vmatpush1.bf16.msra.mxu0 %v6307_v36  ;;  %v6358_v36 = vld [vmem:[#allocation5 + $0x4c0] ss:$24 sps:$4 sm:$0xff]  }
 0x176   :  { %2322 = vmatprep.subr.bf16.mxu0 %v6312_v37  ;;  %v6363_v37 = vld [vmem:[#allocation5 + $0x4f4] ss:$24 sps:$4 sm:$0xff]  }
 0x177   :  { %4269 = vmatpush1.bf16.msra.mxu1 %v6469_v18  ;;  %v6456_v18 = vld [vmem:[#allocation5 + $0x8e4] ss:$24 sps:$4 sm:$0xff]  }
 0x178   :  { %4270 = vmatprep.subr.bf16.mxu1 %v6477_v21  ;;  %v6460_v21 = vld [vmem:[#allocation5 + $0x910] ss:$24 sps:$4 sm:$0xff]  }
 0x179   :  { %2323 = vmatpush1.bf16.msra.mxu0 %v6310_v40  ;;  %v6364_v40 = vld [vmem:[#allocation5 + $0x520] ss:$24 sps:$4 sm:$0xff]  }
 0x17a   :  { %2324 = vmatprep.subr.bf16.mxu0 %v6315_v41  ;;  %v6369_v41 = vld [vmem:[#allocation5 + $0x554] ss:$24 sps:$4 sm:$0xff]  }
 0x17b   :  { %4271 = vmatpush1.bf16.msra.mxu1 %v6475_v23  ;;  %v421_v23 = vlaneseq }
 0x17c   :  { %4272 = vmatprep.subr.bf16.mxu1 %v6483_v25 }
 0x17d   :  { %2325 = vmatpush1.bf16.msra.mxu0 %v6313_v44  ;;  %v6370_v44 = vld [vmem:[#allocation5 + $0x580] ss:$24 sps:$4 sm:$0xff]   ;;  %v7249_v25 = vshrl.u32 %v421_v23, 7 }
 0x17e   :  { %2326 = vmatprep.subr.bf16.mxu0 %v6318_v45  ;;  %v6375_v45 = vld [vmem:[#allocation5 + $0x5b4] ss:$24 sps:$4 sm:$0xff]  }
 0x17f   :  { %4273 = vmatpush1.bf16.msra.mxu1 %v6481_v26  ;;  %v423_v26 = vsub.s32 0, %v7249_v25  ;;  %v6519_v23 = vld [vmem:[#allocation8 + $0x3f4] ss:$24 sps:$4 sm:$0xff]  }
 0x180   :  { %4285 = vmatprep.subr.bf16.mxu1 %v6489_v29  ;;  %v427_v29 = vsub.s32 1, %v7249_v25 }
 0x181   :  { %2327 = vmatpush1.bf16.msra.mxu0 %v6316_v48  ;;  %v6376_v48 = vld [vmem:[#allocation5 + $0x5e0] ss:$24 sps:$4 sm:$0xff]  }
 0x182   :  { %2328 = vmatprep.subr.bf16.mxu0 %v6321_v49  ;;  %v6381_v49 = vld [vmem:[#allocation5 + $0x614] ss:$24 sps:$4 sm:$0xff]  }
 0x185   :  { %2329 = vmatpush1.bf16.msra.mxu0 %v6319_v52  ;;  %v6913_v52 = vld [vmem:[#allocation2 + $0x8] ss:$28 sps:$4 sm:$0xff]  }
 0x186   :  { %2330 = vmatprep.subr.bf16.mxu0 %v6324_v53  ;;  %v6382_v53 = vld [vmem:[#allocation5 + $0x640] ss:$24 sps:$4 sm:$0xff]  }
 0x189   :  { %2331 = vmatpush1.bf16.msra.mxu0 %v6322_v56  ;;  %v6385_v56 = vld [vmem:[#allocation5 + $0x670] ss:$24 sps:$4 sm:$0xff]  }
 0x18a   :  { %2332 = vmatprep.subr.bf16.mxu0 %v6327_v57  ;;  %v6390_v57 = vld [vmem:[#allocation5 + $0x6a4] ss:$24 sps:$4 sm:$0xff]  }
 0x18d   :  { %2333 = vmatpush1.bf16.msra.mxu0 %v6325_v60  ;;  %v6391_v60 = vld [vmem:[#allocation5 + $0x6d0] ss:$24 sps:$4 sm:$0xff]  }
 0x18e   :  { %2334 = vmatprep.subr.bf16.mxu0 %v6330_v61  ;;  %v6396_v61 = vld [vmem:[#allocation5 + $0x704] ss:$24 sps:$4 sm:$0xff]  }
 0x191   :  { %2335 = vmatpush1.bf16.msra.mxu0 %v6328_v0  ;;  %v6400_v0 = vld [vmem:[#allocation5 + $0x730] ss:$24 sps:$4 sm:$0xff]  }
 0x192   :  { %2347 = vmatprep.subr.bf16.mxu0 %v6333_v1  ;;  %v6408_v1 = vld [vmem:[#allocation5 + $0x764] ss:$24 sps:$4 sm:$0xff]  }
 0x194   :  { %2337 = vmatmul.mubr.bf16.vlgmr.msra.gmra.mrb[8].mxu0 %v6911_v8  ;;  %v6424_v8 = vld [vmem:[#allocation5 + $0x7f0] ss:$24 sps:$4 sm:$0xff]  }
 0x195   :  { %2348 = vmatpush1.bf16.msra.mxu0 %v6331_v4  ;;  %2379 = vmatprep.mubr.bf16.mxu0 %v6912_v11  ;;  %v6412_v4 = vld [vmem:[#allocation5 + $0x790] ss:$24 sps:$4 sm:$0xff]   ;;  %v6430_v11 = vld [vmem:[#allocation5 + $0x820] ss:$24 sps:$4 sm:$0xff]  }
 0x196   :  { %2349 = vmatprep.subr.bf16.mxu0 %v6336_v5  ;;  %v6420_v5 = vld [vmem:[#allocation5 + $0x7c4] ss:$24 sps:$4 sm:$0xff]  }
 0x199   :  { %2350 = vmatpush1.bf16.msra.mxu0 %v6334_v10  ;;  %v6432_v10 = vld [vmem:[#allocation5 + $0x824] ss:$24 sps:$4 sm:$0xff]  }
 0x19a   :  { %2351 = vmatprep.subr.bf16.mxu0 %v6339_v13  ;;  %v6436_v13 = vld [vmem:[#allocation5 + $0x850] ss:$24 sps:$4 sm:$0xff]  }
 0x19d   :  { %2352 = vmatpush1.bf16.msra.mxu0 %v6337_v15  ;;  %v6442_v15 = vld [vmem:[#allocation5 + $0x880] ss:$24 sps:$4 sm:$0xff]  }
 0x19e   :  { %2353 = vmatprep.subr.bf16.mxu0 %v6342_v17  ;;  %v6448_v17 = vld [vmem:[#allocation5 + $0x8b0] ss:$24 sps:$4 sm:$0xff]  }
 0x1a1   :  { %2354 = vmatpush1.bf16.msra.mxu0 %v6340_v19  ;;  %v6454_v19 = vld [vmem:[#allocation5 + $0x8e0] ss:$24 sps:$4 sm:$0xff]  }
 0x1a2   :  { %2355 = vmatprep.subr.bf16.mxu0 %v6345_v20  ;;  %v6462_v20 = vld [vmem:[#allocation5 + $0x914] ss:$24 sps:$4 sm:$0xff]  }
 0x1a5   :  { %2356 = vmatpush1.bf16.msra.mxu0 %v6343_v22  ;;  %v6474_v22 = vld [vmem:[#allocation8 + $0x14] ss:$24 sps:$4 sm:$0xff]  }
 0x1a6   :  { %2357 = vmatprep.subr.bf16.mxu0 %v6348_v24  ;;  %v6915_v24 = vld [vmem:[#allocation2 + $0x10] ss:$28 sps:$4 sm:$0xff]  }
 0x1a9   :  { %2358 = vmatpush1.bf16.msra.mxu0 %v6346_v27 }
 0x1aa   :  { %2359 = vmatprep.subr.bf16.mxu0 %v6351_v28  ;;  %v7252_v28 = vld [vmem:[#allocation7] sm:$0x3f] }
 0x1ad   :  { %2360 = vmatpush1.bf16.msra.mxu0 %v6349_v30 }
 0x1ae   :  { %2361 = vmatprep.subr.bf16.mxu0 %v6354_v31  ;;  %v431_v31 = vsub.s32 2, %v7249_v25 }
 0x1b1   :  { %2362 = vmatpush1.bf16.msra.mxu0 %v6352_v32 }
 0x1b2   :  { %2363 = vmatprep.subr.bf16.mxu0 %v6357_v33  ;;  %v6472_v33 = vld [vmem:[#allocation8 + $0x10] ss:$24 sps:$4 sm:$0xff]  }
 0x1b5   :  { %2364 = vmatpush1.bf16.msra.mxu0 %v6355_v34  ;;  %v435_v34 = vsub.s32 3, %v7249_v25 }
 0x1b6   :  { %2365 = vmatprep.subr.bf16.mxu0 %v6360_v35 }
 0x1b9   :  { %2366 = vmatpush1.bf16.msra.mxu0 %v6358_v36  ;;  %v6480_v36 = vld [vmem:[#allocation8 + $0x44] ss:$24 sps:$4 sm:$0xff]  }
 0x1ba   :  { %2367 = vmatprep.subr.bf16.mxu0 %v6363_v37 }
 0x1bd   :  { %2368 = vmatpush1.bf16.msra.mxu0 %v6361_v38  ;;  %v428_v38 = vrot.slane %v7252_v28, %v427_v29 }
 0x1be   :  { %2369 = vmatprep.subr.bf16.mxu0 %v6366_v39  ;;  %v6916_v39 = vld [vmem:[#allocation2 + $0x18] ss:$28 sps:$4 sm:$0xff]  }
 0x1c1   :  { %2370 = vmatpush1.bf16.msra.mxu0 %v6364_v40 }
 0x1c2   :  { %2371 = vmatprep.subr.bf16.mxu0 %v6369_v41  ;;  %v432_v41 = vrot.slane %v7252_v28, %v431_v31 }
 0x1c5   :  { %2372 = vmatpush1.bf16.msra.mxu0 %v6367_v42 }
 0x1c6   :  { %2373 = vmatprep.subr.bf16.mxu0 %v6372_v43  ;;  %v6478_v43 = vld [vmem:[#allocation8 + $0x40] ss:$24 sps:$4 sm:$0xff]  }
 0x1c9   :  { %2374 = vmatpush1.bf16.msra.mxu0 %v6370_v44  ;;  %v436_v44 = vrot.slane %v7252_v28, %v435_v34 }
 0x1ca   :  { %2375 = vmatprep.subr.bf16.mxu0 %v6375_v45 }
 0x1cd   :  { %2376 = vmatpush1.bf16.msra.mxu0 %v6373_v46 }
 0x1ce   :  { %2377 = vmatprep.subr.bf16.mxu0 %v6378_v47 }
 0x1d1   :  { %2378 = vmatpush1.bf16.msra.mxu0 %v6376_v48  ;;  %v6486_v48 = vld [vmem:[#allocation8 + $0x74] ss:$24 sps:$4 sm:$0xff]  }
 0x1d2   :  { %2390 = vmatprep.subr.bf16.mxu0 %v6381_v49 }
 0x1d4   :  { %2380 = vmatmul.mubr.bf16.vlgmr.msra.gmra.mrb[8].mxu0 %v6913_v52 }
 0x1d5   :  { %2391 = vmatpush1.bf16.msra.mxu0 %v6379_v50  ;;  %2422 = vmatprep.mubr.bf16.mxu0 %v6914_v54 }
 0x1d6   :  { %2392 = vmatprep.subr.bf16.mxu0 %v6384_v51 }
 0x1d9   :  { %2393 = vmatpush1.bf16.msra.mxu0 %v6382_v53 }
 0x1da   :  { %2394 = vmatprep.subr.bf16.mxu0 %v6387_v55  ;;  %v6484_v55 = vld [vmem:[#allocation8 + $0x70] ss:$24 sps:$4 sm:$0xff]  }
 0x1dd   :  { %2395 = vmatpush1.bf16.msra.mxu0 %v6385_v56  ;;  %v6487_v56 = vld [vmem:[#allocation8 + $0x300] ss:$24 sps:$4 sm:$0xff]  }
 0x1de   :  { %2396 = vmatprep.subr.bf16.mxu0 %v6390_v57 }
 0x1e1   :  { %2397 = vmatpush1.bf16.msra.mxu0 %v6388_v58  ;;  %v6492_v58 = vld [vmem:[#allocation8 + $0xa4] ss:$24 sps:$4 sm:$0xff]  }
 0x1e2   :  { %2398 = vmatprep.subr.bf16.mxu0 %v6393_v59  ;;  %v6495_v59 = vld [vmem:[#allocation8 + $0x334] ss:$24 sps:$4 sm:$0xff]  }
 0x1e5   :  { %2399 = vmatpush1.bf16.msra.mxu0 %v6391_v60 }
 0x1e6   :  { %2400 = vmatprep.subr.bf16.mxu0 %v6396_v61 }
 0x1e9   :  { %2401 = vmatpush1.bf16.msra.mxu0 %v6394_v62 }
 0x1ea   :  { %2402 = vmatprep.subr.bf16.mxu0 %v6402_v63 }
 0x1ed   :  { %2403 = vmatpush1.bf16.msra.mxu0 %v6400_v0 }
 0x1ee   :  { %2404 = vmatprep.subr.bf16.mxu0 %v6408_v1 }
 0x1f1   :  { %2405 = vmatpush1.bf16.msra.mxu0 %v6406_v2  ;;  %v6490_v2 = vld [vmem:[#allocation8 + $0xa0] ss:$24 sps:$4 sm:$0xff]  }
 0x1f2   :  { %2406 = vmatprep.subr.bf16.mxu0 %v6414_v3  ;;  %v6493_v3 = vld [vmem:[#allocation8 + $0x330] ss:$24 sps:$4 sm:$0xff]  }
 0x1f5   :  { %2407 = vmatpush1.bf16.msra.mxu0 %v6412_v4 }
 0x1f6   :  { %2408 = vmatprep.subr.bf16.mxu0 %v6420_v5 }
 0x1f9   :  { %2409 = vmatpush1.bf16.msra.mxu0 %v6418_v6  ;;  %v6498_v6 = vld [vmem:[#allocation8 + $0xd4] ss:$24 sps:$4 sm:$0xff]  }
 0x1fa   :  { %2410 = vmatprep.subr.bf16.mxu0 %v6426_v7  ;;  %v6501_v7 = vld [vmem:[#allocation8 + $0x364] ss:$24 sps:$4 sm:$0xff]  }
 0x1fd   :  { %2411 = vmatpush1.bf16.msra.mxu0 %v6424_v8 }
 0x1fe   :  { %2412 = vmatprep.subr.bf16.mxu0 %v6432_v10 }
 0x201   :  { %2413 = vmatpush1.bf16.msra.mxu0 %v6430_v11 }
 0x202   :  { %2414 = vmatprep.subr.bf16.mxu0 %v6438_v12  ;;  %v6496_v12 = vld [vmem:[#allocation8 + $0xd0] ss:$24 sps:$4 sm:$0xff]  }
 0x205   :  { %2415 = vmatpush1.bf16.msra.mxu0 %v6436_v13  ;;  %v6499_v13 = vld [vmem:[#allocation8 + $0x360] ss:$24 sps:$4 sm:$0xff]  }
 0x206   :  { %2416 = vmatprep.subr.bf16.mxu0 %v6444_v14  ;;  %v6504_v14 = vld [vmem:[#allocation8 + $0x104] ss:$24 sps:$4 sm:$0xff]  }
 0x209   :  { %2417 = vmatpush1.bf16.msra.mxu0 %v6442_v15  ;;  %v6507_v15 = vld [vmem:[#allocation8 + $0x394] ss:$24 sps:$4 sm:$0xff]  }
 0x20a   :  { %2418 = vmatprep.subr.bf16.mxu0 %v6450_v16  ;;  %v6502_v16 = vld [vmem:[#allocation8 + $0x100] ss:$24 sps:$4 sm:$0xff]  }
 0x20d   :  { %2419 = vmatpush1.bf16.msra.mxu0 %v6448_v17  ;;  %v6505_v17 = vld [vmem:[#allocation8 + $0x390] ss:$24 sps:$4 sm:$0xff]  }
 0x20e   :  { %2420 = vmatprep.subr.bf16.mxu0 %v6456_v18  ;;  %v6510_v18 = vld [vmem:[#allocation8 + $0x134] ss:$24 sps:$4 sm:$0xff]  }
 0x211   :  { %2421 = vmatpush1.bf16.msra.mxu0 %v6454_v19  ;;  %v6513_v19 = vld [vmem:[#allocation8 + $0x3c4] ss:$24 sps:$4 sm:$0xff]  }
 0x212   :  { %2433 = vmatprep.subr.bf16.mxu0 %v6462_v20  ;;  %v6508_v20 = vld [vmem:[#allocation8 + $0x130] ss:$24 sps:$4 sm:$0xff]  }
 0x214   :  { %2423 = vmatmul.mubr.bf16.vlgmr.msra.gmra.mrb[8].mxu0 %v6915_v24  ;;  %v6514_v24 = vld [vmem:[#allocation8 + $0x160] ss:$24 sps:$4 sm:$0xff]  }
 0x215   :  { %2434 = vmatpush1.bf16.msra.mxu0 %v6460_v21  ;;  %2465 = vmatprep.mubr.bf16.mxu0 %v7116_v9  ;;  %v2252_v27 = vpop.f32.mrb[0].mxu1  ;;  %v424_v9 = vrot.slane %v7252_v28, %v423_v26  ;;  %v6511_v21 = vld [vmem:[#allocation8 + $0x3c0] ss:$24 sps:$4 sm:$0xff]  }
 0x216   :  { %4500 = vmatprep.subr.bf16.mxu0 %v6474_v22  ;;  %v2254_v30 = vpop.f32.mrb[1].mxu1  ;;  %v5882_v52 = vadd.f32 %v2252_v27, %v432_v41  ;;  %v6516_v22 = vld [vmem:[#allocation8 + $0x164] ss:$24 sps:$4 sm:$0xff]   ;;  %v6517_v27 = vld [vmem:[#allocation8 + $0x3f0] ss:$24 sps:$4 sm:$0xff]  }
 0x217   :  { %v2256_v32 = vpop.f32.mrb[2].mxu1  ;;  %v5884_v54 = vadd.f32 %v2254_v30, %v436_v44  ;;  %v6522_v30 = vld [vmem:[#allocation8 + $0x194] ss:$24 sps:$4 sm:$0xff]  }
 0x218   :  { %v2258_v35 = vpop.f32.mrb[3].mxu1  ;;  %v5886_v57 = vadd.f32 %v2256_v32, %v432_v41  ;;  %v6525_v32 = vld [vmem:[#allocation8 + $0x424] ss:$24 sps:$4 sm:$0xff]   ;;  %v6532_v41 = vld [vmem:[#allocation8 + $0x1f0] ss:$24 sps:$4 sm:$0xff]  }
 0x219   :  { %v5888_v61 = vadd.f32 %v2258_v35, %v436_v44  ;;  %v6523_v35 = vld [vmem:[#allocation8 + $0x420] ss:$24 sps:$4 sm:$0xff]   ;;  %v6543_v44 = vld [vmem:[#allocation8 + $0x4b4] ss:$24 sps:$4 sm:$0xff]  }
 0x21f   :  { %v2123_v37 = vpop.f32.mrb[0].mxu0 }
 0x220   :  { %5474 = vmatmul.mubr.msk.bf16.vlgmr.msra.gmra.mrb[8].mxu0 %vm1956_vm0, %v6916_v39  ;;  %v2125_v40 = vpop.f32.mrb[1].mxu0  ;;  %v5878_v45 = vadd.f32 %v2123_v37, %v424_v9  ;;  %v6526_v37 = vld [vmem:[#allocation8 + $0x1c0] ss:$24 sps:$4 sm:$0xff]   ;;  %v6534_v39 = vld [vmem:[#allocation8 + $0x1f4] ss:$24 sps:$4 sm:$0xff]  }
 0x221   :  { %4501 = vmatpush1.bf16.msra.mxu0 %v6472_v33  ;;  %v2127_v42 = vpop.f32.mrb[2].mxu0  ;;  %v5879_v49 = vadd.f32 %v2125_v40, %v428_v38  ;;  %v6520_v33 = vld [vmem:[#allocation8 + $0x190] ss:$24 sps:$4 sm:$0xff]   ;;  %v6537_v40 = vld [vmem:[#allocation8 + $0x484] ss:$24 sps:$4 sm:$0xff]  }
 0x222   :  { %v5880_v46 = vadd.f32 %v2127_v42, %v424_v9  ;;  %v2129_v47 = vpop.f32.mrb[3].mxu0  ;;  %4502 = vmatprep.subr.bf16.mxu0 %v6480_v36  ;;  %v6528_v9 = vld [vmem:[#allocation8 + $0x1c4] ss:$24 sps:$4 sm:$0xff]   ;;  %v6531_v36 = vld [vmem:[#allocation8 + $0x454] ss:$24 sps:$4 sm:$0xff]  }
 0x223   :  { %v5881_v50 = vadd.f32 %v2129_v47, %v428_v38  ;;  %v6529_v38 = vld [vmem:[#allocation8 + $0x450] ss:$24 sps:$4 sm:$0xff]   ;;  %v6535_v42 = vld [vmem:[#allocation8 + $0x480] ss:$24 sps:$4 sm:$0xff]   ;;  %v6546_v47 = vld [vmem:[#allocation8 + $0x254] ss:$24 sps:$4 sm:$0xff]  }
 0x224   :  { %v7270_v51 = vpack.c.bf16 %v5880_v46, %v5878_v45  ;;  %v6538_v45 = vld [vmem:[#allocation8 + $0x220] ss:$24 sps:$4 sm:$0xff]   ;;  %v6541_v46 = vld [vmem:[#allocation8 + $0x4b0] ss:$24 sps:$4 sm:$0xff]  }
 0x225   :  { %v7272_v53 = vpack.c.bf16 %v5881_v50, %v5879_v49  ;;  %4503 = vmatpush1.bf16.msra.mxu0 %v6478_v43  ;;  %v6540_v43 = vld [vmem:[#allocation8 + $0x224] ss:$24 sps:$4 sm:$0xff]   ;;  %v6544_v49 = vld [vmem:[#allocation8 + $0x250] ss:$24 sps:$4 sm:$0xff]   ;;  %v6547_v50 = vld [vmem:[#allocation8 + $0x4e0] ss:$24 sps:$4 sm:$0xff]  }
 0x226   :  { %4504 = vmatprep.subr.bf16.mxu0 %v6486_v48  ;;  %v6549_v48 = vld [vmem:[#allocation8 + $0x4e4] ss:$24 sps:$4 sm:$0xff]  }
 0x227   :  { %v2295_v60 = vpop.f32.mrb[4].mxu0  ;;  %4274 = vmatprep.mubr.bf16.mxu1 %v7272_v53  ;;  %4532 = vmatprep.mubr.bf16.mxu0 %v7272_v53 }
 0x228   :  { %v5883_v62 = vadd.f32 %v5882_v52, %v2295_v60  ;;  %v2297_v63 = vpop.f32.mrb[5].mxu0  ;;  %4275 = vmatmul.mubr.bf16.vlgmr.msra.gmra.mrb[4].mxu1 %v7270_v51  ;;  %v6552_v52 = vld [vmem:[#allocation8 + $0x284] ss:$24 sps:$4 sm:$0xff]   ;;  %v6559_v60 = vld [vmem:[#allocation8 + $0x540] ss:$24 sps:$4 sm:$0xff]  }
 0x229   :  { %4505 = vmatpush1.bf16.msra.mxu0 %v6484_v55  ;;  %v5885_v0 = vadd.f32 %v5884_v54, %v2297_v63  ;;  %4286 = vmatpush1.bf16.msra.mxu1 %v6487_v56  ;;  %v2299_v1 = vpop.f32.mrb[6].mxu0  ;;  %v6555_v54 = vld [vmem:[#allocation8 + $0x514] ss:$24 sps:$4 sm:$0xff]   ;;  %v6550_v55 = vld [vmem:[#allocation8 + $0x280] ss:$24 sps:$4 sm:$0xff]  }
 0x22a   :  { %v5887_v4 = vadd.f32 %v5886_v57, %v2299_v1  ;;  %v2301_v5 = vpop.f32.mrb[7].mxu0  ;;  %4506 = vmatprep.subr.bf16.mxu0 %v6492_v58  ;;  %4287 = vmatprep.subr.bf16.mxu1 %v6495_v59  ;;  %v6553_v56 = vld [vmem:[#allocation8 + $0x510] ss:$24 sps:$4 sm:$0xff]   ;;  %v6558_v57 = vld [vmem:[#allocation8 + $0x2b4] ss:$24 sps:$4 sm:$0xff]  }
 0x22b   :  { %v5889_v8 = vadd.f32 %v5888_v61, %v2301_v5  ;;  %v6561_v58 = vld [vmem:[#allocation8 + $0x544] ss:$24 sps:$4 sm:$0xff]   ;;  %v6556_v59 = vld [vmem:[#allocation8 + $0x2b0] ss:$24 sps:$4 sm:$0xff]   ;;  %v6562_v63 = vld [vmem:[#allocation8 + $0x2e0] ss:$24 sps:$4 sm:$0xff]  }
 0x22c   :  { %v7277_v10 = vpack.c.bf16 %v5887_v4, %v5883_v62  ;;  %v6564_v61 = vld [vmem:[#allocation8 + $0x2e4] ss:$24 sps:$4 sm:$0xff]   ;;  %v6567_v62 = vld [vmem:[#allocation8 + $0x574] ss:$24 sps:$4 sm:$0xff]   ;;  %v6571_v4 = vld [vmem:[#allocation8 + $0x5a0] ss:$24 sps:$4 sm:$0xff]  }
 0x22d   :  { %v7279_v11 = vpack.c.bf16 %v5889_v8, %v5885_v0  ;;  %4507 = vmatpush1.bf16.msra.mxu0 %v6490_v2  ;;  %4288 = vmatpush1.bf16.msra.mxu1 %v6493_v3  ;;  %v6565_v0 = vld [vmem:[#allocation8 + $0x570] ss:$24 sps:$4 sm:$0xff]   ;;  %v6570_v1 = vld [vmem:[#allocation8 + $0x314] ss:$24 sps:$4 sm:$0xff]   ;;  %v6573_v2 = vld [vmem:[#allocation8 + $0x5a4] ss:$24 sps:$4 sm:$0xff]  }
 0x22e   :  { %4508 = vmatprep.subr.bf16.mxu0 %v6498_v6  ;;  %4289 = vmatprep.subr.bf16.mxu1 %v6501_v7  ;;  %v6568_v3 = vld [vmem:[#allocation8 + $0x310] ss:$24 sps:$4 sm:$0xff]   ;;  %v6576_v5 = vld [vmem:[#allocation8 + $0x344] ss:$24 sps:$4 sm:$0xff]   ;;  %v6579_v6 = vld [vmem:[#allocation8 + $0x5d4] ss:$24 sps:$4 sm:$0xff]  }
 0x22f   :  { %4317 = vmatprep.mubr.bf16.mxu1 %v7279_v11  ;;  %v6574_v7 = vld [vmem:[#allocation8 + $0x340] ss:$24 sps:$4 sm:$0xff]   ;;  %v6577_v8 = vld [vmem:[#allocation8 + $0x5d0] ss:$24 sps:$4 sm:$0xff]  }
 0x231   :  { %4509 = vmatpush1.bf16.msra.mxu0 %v6496_v12  ;;  %4290 = vmatpush1.bf16.msra.mxu1 %v6499_v13  ;;  %v6582_v12 = vld [vmem:[#allocation8 + $0x374] ss:$24 sps:$4 sm:$0xff]   ;;  %v6624_v13 = vld [vmem:[#allocation8 + $0x604] ss:$24 sps:$4 sm:$0xff]  }
 0x232   :  { %4510 = vmatprep.subr.bf16.mxu0 %v6504_v14  ;;  %4291 = vmatprep.subr.bf16.mxu1 %v6507_v15  ;;  %v6580_v14 = vld [vmem:[#allocation8 + $0x370] ss:$24 sps:$4 sm:$0xff]   ;;  %v6585_v15 = vld [vmem:[#allocation8 + $0x3a4] ss:$24 sps:$4 sm:$0xff]  }
 0x235   :  { %4511 = vmatpush1.bf16.msra.mxu0 %v6502_v16  ;;  %4292 = vmatpush1.bf16.msra.mxu1 %v6505_v17  ;;  %v6622_v16 = vld [vmem:[#allocation8 + $0x600] ss:$24 sps:$4 sm:$0xff]   ;;  %v6630_v17 = vld [vmem:[#allocation8 + $0x634] ss:$24 sps:$4 sm:$0xff]  }
 0x236   :  { %4512 = vmatprep.subr.bf16.mxu0 %v6510_v18  ;;  %4293 = vmatprep.subr.bf16.mxu1 %v6513_v19  ;;  %v6583_v18 = vld [vmem:[#allocation8 + $0x3a0] ss:$24 sps:$4 sm:$0xff]   ;;  %v6588_v19 = vld [vmem:[#allocation8 + $0x3d4] ss:$24 sps:$4 sm:$0xff]  }
 0x239   :  { %4513 = vmatpush1.bf16.msra.mxu0 %v6508_v20  ;;  %4294 = vmatpush1.bf16.msra.mxu1 %v6511_v21  ;;  %v6628_v20 = vld [vmem:[#allocation8 + $0x630] ss:$24 sps:$4 sm:$0xff]   ;;  %v6636_v21 = vld [vmem:[#allocation8 + $0x664] ss:$24 sps:$4 sm:$0xff]  }
 0x23a   :  { %4514 = vmatprep.subr.bf16.mxu0 %v6516_v22  ;;  %4295 = vmatprep.subr.bf16.mxu1 %v6519_v23  ;;  %v6586_v22 = vld [vmem:[#allocation8 + $0x3d0] ss:$24 sps:$4 sm:$0xff]   ;;  %v6591_v23 = vld [vmem:[#allocation8 + $0x404] ss:$24 sps:$4 sm:$0xff]  }
 0x23d   :  { %4515 = vmatpush1.bf16.msra.mxu0 %v6514_v24  ;;  %4296 = vmatpush1.bf16.msra.mxu1 %v6517_v27  ;;  %v6634_v24 = vld [vmem:[#allocation8 + $0x660] ss:$24 sps:$4 sm:$0xff]   ;;  %v6642_v27 = vld [vmem:[#allocation8 + $0x694] ss:$24 sps:$4 sm:$0xff]  }
 0x23e   :  { %4516 = vmatprep.subr.bf16.mxu0 %v6522_v30  ;;  %4297 = vmatprep.subr.bf16.mxu1 %v6525_v32  ;;  %v6589_v30 = vld [vmem:[#allocation8 + $0x400] ss:$24 sps:$4 sm:$0xff]   ;;  %v6594_v32 = vld [vmem:[#allocation8 + $0x434] ss:$24 sps:$4 sm:$0xff]  }
 0x241   :  { %4517 = vmatpush1.bf16.msra.mxu0 %v6520_v33  ;;  %4298 = vmatpush1.bf16.msra.mxu1 %v6523_v35  ;;  %v6640_v33 = vld [vmem:[#allocation8 + $0x690] ss:$24 sps:$4 sm:$0xff]   ;;  %v6648_v35 = vld [vmem:[#allocation8 + $0x6c4] ss:$24 sps:$4 sm:$0xff]  }
 0x242   :  { %4518 = vmatprep.subr.bf16.mxu0 %v6528_v9  ;;  %4299 = vmatprep.subr.bf16.mxu1 %v6531_v36  ;;  %v6592_v9 = vld [vmem:[#allocation8 + $0x430] ss:$24 sps:$4 sm:$0xff]   ;;  %v6597_v36 = vld [vmem:[#allocation8 + $0x464] ss:$24 sps:$4 sm:$0xff]  }
 0x245   :  { %4519 = vmatpush1.bf16.msra.mxu0 %v6526_v37  ;;  %4300 = vmatpush1.bf16.msra.mxu1 %v6529_v38  ;;  %v6646_v37 = vld [vmem:[#allocation8 + $0x6c0] ss:$24 sps:$4 sm:$0xff]   ;;  %v6654_v38 = vld [vmem:[#allocation8 + $0x6f4] ss:$24 sps:$4 sm:$0xff]  }
 0x246   :  { %4520 = vmatprep.subr.bf16.mxu0 %v6534_v39  ;;  %4301 = vmatprep.subr.bf16.mxu1 %v6537_v40  ;;  %v6595_v39 = vld [vmem:[#allocation8 + $0x460] ss:$24 sps:$4 sm:$0xff]   ;;  %v6600_v40 = vld [vmem:[#allocation8 + $0x494] ss:$24 sps:$4 sm:$0xff]  }
 0x249   :  { %4521 = vmatpush1.bf16.msra.mxu0 %v6532_v41  ;;  %4302 = vmatpush1.bf16.msra.mxu1 %v6535_v42  ;;  %v6652_v41 = vld [vmem:[#allocation8 + $0x6f0] ss:$24 sps:$4 sm:$0xff]   ;;  %v6660_v42 = vld [vmem:[#allocation8 + $0x724] ss:$24 sps:$4 sm:$0xff]  }
 0x24a   :  { %4522 = vmatprep.subr.bf16.mxu0 %v6540_v43  ;;  %4303 = vmatprep.subr.bf16.mxu1 %v6543_v44  ;;  %v6598_v43 = vld [vmem:[#allocation8 + $0x490] ss:$24 sps:$4 sm:$0xff]   ;;  %v6603_v44 = vld [vmem:[#allocation8 + $0x4c4] ss:$24 sps:$4 sm:$0xff]  }
 0x24d   :  { %4523 = vmatpush1.bf16.msra.mxu0 %v6538_v45  ;;  %4304 = vmatpush1.bf16.msra.mxu1 %v6541_v46  ;;  %v6658_v45 = vld [vmem:[#allocation8 + $0x720] ss:$24 sps:$4 sm:$0xff]   ;;  %v6666_v46 = vld [vmem:[#allocation8 + $0x754] ss:$24 sps:$4 sm:$0xff]  }
 0x24e   :  { %4524 = vmatprep.subr.bf16.mxu0 %v6546_v47  ;;  %4305 = vmatprep.subr.bf16.mxu1 %v6549_v48  ;;  %v6601_v47 = vld [vmem:[#allocation8 + $0x4c0] ss:$24 sps:$4 sm:$0xff]   ;;  %v6606_v48 = vld [vmem:[#allocation8 + $0x4f4] ss:$24 sps:$4 sm:$0xff]  }
 0x251   :  { %4525 = vmatpush1.bf16.msra.mxu0 %v6544_v49  ;;  %4306 = vmatpush1.bf16.msra.mxu1 %v6547_v50  ;;  %v6664_v49 = vld [vmem:[#allocation8 + $0x750] ss:$24 sps:$4 sm:$0xff]   ;;  %v6672_v50 = vld [vmem:[#allocation8 + $0x784] ss:$24 sps:$4 sm:$0xff]  }
 0x252   :  { %4526 = vmatprep.subr.bf16.mxu0 %v6552_v52  ;;  %4307 = vmatprep.subr.bf16.mxu1 %v6555_v54  ;;  %v6604_v52 = vld [vmem:[#allocation8 + $0x4f0] ss:$24 sps:$4 sm:$0xff]   ;;  %v6609_v54 = vld [vmem:[#allocation8 + $0x524] ss:$24 sps:$4 sm:$0xff]  }
 0x255   :  { %4527 = vmatpush1.bf16.msra.mxu0 %v6550_v55  ;;  %4308 = vmatpush1.bf16.msra.mxu1 %v6553_v56  ;;  %v6670_v55 = vld [vmem:[#allocation8 + $0x780] ss:$24 sps:$4 sm:$0xff]   ;;  %v6678_v56 = vld [vmem:[#allocation8 + $0x7b4] ss:$24 sps:$4 sm:$0xff]  }
 0x256   :  { %4528 = vmatprep.subr.bf16.mxu0 %v6558_v57  ;;  %4309 = vmatprep.subr.bf16.mxu1 %v6561_v58  ;;  %v6607_v57 = vld [vmem:[#allocation8 + $0x520] ss:$24 sps:$4 sm:$0xff]   ;;  %v6612_v58 = vld [vmem:[#allocation8 + $0x554] ss:$24 sps:$4 sm:$0xff]  }
 0x259   :  { %4529 = vmatpush1.bf16.msra.mxu0 %v6556_v59  ;;  %4310 = vmatpush1.bf16.msra.mxu1 %v6559_v60  ;;  %v6676_v59 = vld [vmem:[#allocation8 + $0x7b0] ss:$24 sps:$4 sm:$0xff]   ;;  %v6684_v60 = vld [vmem:[#allocation8 + $0x7e4] ss:$24 sps:$4 sm:$0xff]  }
 0x25a   :  { %4530 = vmatprep.subr.bf16.mxu0 %v6564_v61  ;;  %4311 = vmatprep.subr.bf16.mxu1 %v6567_v62  ;;  %v6610_v61 = vld [vmem:[#allocation8 + $0x550] ss:$24 sps:$4 sm:$0xff]   ;;  %v6615_v62 = vld [vmem:[#allocation8 + $0x584] ss:$24 sps:$4 sm:$0xff]  }
 0x25d   :  { %4531 = vmatpush1.bf16.msra.mxu0 %v6562_v63  ;;  %4312 = vmatpush1.bf16.msra.mxu1 %v6565_v0  ;;  %v6682_v63 = vld [vmem:[#allocation8 + $0x7e0] ss:$24 sps:$4 sm:$0xff]   ;;  %v6690_v0 = vld [vmem:[#allocation8 + $0x814] ss:$24 sps:$4 sm:$0xff]  }
 0x25e   :  { %4543 = vmatprep.subr.bf16.mxu0 %v6570_v1  ;;  %4313 = vmatprep.subr.bf16.mxu1 %v6573_v2  ;;  %v6613_v1 = vld [vmem:[#allocation8 + $0x580] ss:$24 sps:$4 sm:$0xff]   ;;  %v6618_v2 = vld [vmem:[#allocation8 + $0x5b4] ss:$24 sps:$4 sm:$0xff]  }
 0x260   :  { %4533 = vmatmul.mubr.bf16.vlgmr.msra.gmra.mrb[12].mxu0 %v7270_v51 }
 0x261   :  { %4544 = vmatpush1.bf16.msra.mxu0 %v6568_v3  ;;  %4575 = vmatprep.mubr.bf16.mxu0 %v7279_v11  ;;  %v6688_v3 = vld [vmem:[#allocation8 + $0x810] ss:$24 sps:$4 sm:$0xff]  }
 0x262   :  { %4314 = vmatpush1.bf16.msra.mxu1 %v6571_v4  ;;  %4545 = vmatprep.subr.bf16.mxu0 %v6576_v5  ;;  %v6696_v4 = vld [vmem:[#allocation8 + $0x844] ss:$24 sps:$4 sm:$0xff]   ;;  %v6616_v5 = vld [vmem:[#allocation8 + $0x5b0] ss:$24 sps:$4 sm:$0xff]  }
 0x263   :  { %4315 = vmatprep.subr.bf16.mxu1 %v6579_v6  ;;  %v6621_v6 = vld [vmem:[#allocation8 + $0x5e4] ss:$24 sps:$4 sm:$0xff]  }
 0x265   :  { %4546 = vmatpush1.bf16.msra.mxu0 %v6574_v7  ;;  %v6694_v7 = vld [vmem:[#allocation8 + $0x840] ss:$24 sps:$4 sm:$0xff]  }
 0x266   :  { %4316 = vmatpush1.bf16.msra.mxu1 %v6577_v8  ;;  %4547 = vmatprep.subr.bf16.mxu0 %v6582_v12  ;;  %v6702_v8 = vld [vmem:[#allocation8 + $0x874] ss:$24 sps:$4 sm:$0xff]   ;;  %v6619_v12 = vld [vmem:[#allocation8 + $0x5e0] ss:$24 sps:$4 sm:$0xff]  }
 0x267   :  { %4328 = vmatprep.subr.bf16.mxu1 %v6624_v13  ;;  %v6627_v13 = vld [vmem:[#allocation8 + $0x614] ss:$24 sps:$4 sm:$0xff]  }
 0x269   :  { %4318 = vmatmul.mubr.bf16.vlgmr.msra.gmra.mrb[4].mxu1 %v7277_v10  ;;  %4548 = vmatpush1.bf16.msra.mxu0 %v6580_v14  ;;  %v6700_v14 = vld [vmem:[#allocation8 + $0x870] ss:$24 sps:$4 sm:$0xff]  }
 0x26a   :  { %4549 = vmatprep.subr.bf16.mxu0 %v6585_v15  ;;  %4329 = vmatpush1.bf16.msra.mxu1 %v6622_v16  ;;  %v6708_v15 = vld [vmem:[#allocation8 + $0x8a4] ss:$24 sps:$4 sm:$0xff]   ;;  %v6625_v16 = vld [vmem:[#allocation8 + $0x610] ss:$24 sps:$4 sm:$0xff]  }
 0x26b   :  { %4330 = vmatprep.subr.bf16.mxu1 %v6630_v17  ;;  %v6633_v17 = vld [vmem:[#allocation8 + $0x644] ss:$24 sps:$4 sm:$0xff]  }
 0x26d   :  { %4550 = vmatpush1.bf16.msra.mxu0 %v6583_v18  ;;  %v6706_v18 = vld [vmem:[#allocation8 + $0x8a0] ss:$24 sps:$4 sm:$0xff]  }
 0x26e   :  { %4551 = vmatprep.subr.bf16.mxu0 %v6588_v19  ;;  %4331 = vmatpush1.bf16.msra.mxu1 %v6628_v20  ;;  %v6714_v19 = vld [vmem:[#allocation8 + $0x8d4] ss:$24 sps:$4 sm:$0xff]   ;;  %v6631_v20 = vld [vmem:[#allocation8 + $0x640] ss:$24 sps:$4 sm:$0xff]  }
 0x26f   :  { %4332 = vmatprep.subr.bf16.mxu1 %v6636_v21  ;;  %v6639_v21 = vld [vmem:[#allocation8 + $0x674] ss:$24 sps:$4 sm:$0xff]  }
 0x271   :  { %4552 = vmatpush1.bf16.msra.mxu0 %v6586_v22  ;;  %v6712_v22 = vld [vmem:[#allocation8 + $0x8d0] ss:$24 sps:$4 sm:$0xff]  }
 0x272   :  { %4553 = vmatprep.subr.bf16.mxu0 %v6591_v23  ;;  %4333 = vmatpush1.bf16.msra.mxu1 %v6634_v24  ;;  %v6720_v23 = vld [vmem:[#allocation8 + $0xc] ss:$24 sps:$4 sm:$0xff]   ;;  %v6637_v24 = vld [vmem:[#allocation8 + $0x670] ss:$24 sps:$4 sm:$0xff]  }
 0x273   :  { %4334 = vmatprep.subr.bf16.mxu1 %v6642_v27  ;;  %v6645_v27 = vld [vmem:[#allocation8 + $0x6a4] ss:$24 sps:$4 sm:$0xff]  }
 0x275   :  { %4554 = vmatpush1.bf16.msra.mxu0 %v6589_v30  ;;  %v6643_v30 = vld [vmem:[#allocation8 + $0x6a0] ss:$24 sps:$4 sm:$0xff]  }
 0x276   :  { %4555 = vmatprep.subr.bf16.mxu0 %v6594_v32  ;;  %4335 = vmatpush1.bf16.msra.mxu1 %v6640_v33  ;;  %v6651_v32 = vld [vmem:[#allocation8 + $0x6d4] ss:$24 sps:$4 sm:$0xff]   ;;  %v6649_v33 = vld [vmem:[#allocation8 + $0x6d0] ss:$24 sps:$4 sm:$0xff]  }
 0x277   :  { %4336 = vmatprep.subr.bf16.mxu1 %v6648_v35  ;;  %v6657_v35 = vld [vmem:[#allocation8 + $0x704] ss:$24 sps:$4 sm:$0xff]  }
 0x279   :  { %4556 = vmatpush1.bf16.msra.mxu0 %v6592_v9  ;;  %v6655_v9 = vld [vmem:[#allocation8 + $0x700] ss:$24 sps:$4 sm:$0xff]  }
 0x27a   :  { %4557 = vmatprep.subr.bf16.mxu0 %v6597_v36  ;;  %4337 = vmatpush1.bf16.msra.mxu1 %v6646_v37  ;;  %v6663_v36 = vld [vmem:[#allocation8 + $0x734] ss:$24 sps:$4 sm:$0xff]   ;;  %v6661_v37 = vld [vmem:[#allocation8 + $0x730] ss:$24 sps:$4 sm:$0xff]  }
 0x27b   :  { %4338 = vmatprep.subr.bf16.mxu1 %v6654_v38  ;;  %v6669_v38 = vld [vmem:[#allocation8 + $0x764] ss:$24 sps:$4 sm:$0xff]  }
 0x27d   :  { %4558 = vmatpush1.bf16.msra.mxu0 %v6595_v39  ;;  %v6667_v39 = vld [vmem:[#allocation8 + $0x760] ss:$24 sps:$4 sm:$0xff]  }
 0x27e   :  { %4559 = vmatprep.subr.bf16.mxu0 %v6600_v40  ;;  %4339 = vmatpush1.bf16.msra.mxu1 %v6652_v41  ;;  %v6675_v40 = vld [vmem:[#allocation8 + $0x794] ss:$24 sps:$4 sm:$0xff]   ;;  %v6673_v41 = vld [vmem:[#allocation8 + $0x790] ss:$24 sps:$4 sm:$0xff]  }
 0x27f   :  { %4340 = vmatprep.subr.bf16.mxu1 %v6660_v42  ;;  %v6681_v42 = vld [vmem:[#allocation8 + $0x7c4] ss:$24 sps:$4 sm:$0xff]  }
 0x281   :  { %4560 = vmatpush1.bf16.msra.mxu0 %v6598_v43  ;;  %v6679_v43 = vld [vmem:[#allocation8 + $0x7c0] ss:$24 sps:$4 sm:$0xff]  }
 0x282   :  { %4561 = vmatprep.subr.bf16.mxu0 %v6603_v44  ;;  %4341 = vmatpush1.bf16.msra.mxu1 %v6658_v45  ;;  %v6687_v44 = vld [vmem:[#allocation8 + $0x7f4] ss:$24 sps:$4 sm:$0xff]   ;;  %v6685_v45 = vld [vmem:[#allocation8 + $0x7f0] ss:$24 sps:$4 sm:$0xff]  }
 0x283   :  { %4342 = vmatprep.subr.bf16.mxu1 %v6666_v46  ;;  %v6693_v46 = vld [vmem:[#allocation8 + $0x824] ss:$24 sps:$4 sm:$0xff]  }
 0x285   :  { %4562 = vmatpush1.bf16.msra.mxu0 %v6601_v47  ;;  %v6691_v47 = vld [vmem:[#allocation8 + $0x820] ss:$24 sps:$4 sm:$0xff]  }
 0x286   :  { %4563 = vmatprep.subr.bf16.mxu0 %v6606_v48  ;;  %4343 = vmatpush1.bf16.msra.mxu1 %v6664_v49  ;;  %v6699_v48 = vld [vmem:[#allocation8 + $0x854] ss:$24 sps:$4 sm:$0xff]   ;;  %v6697_v49 = vld [vmem:[#allocation8 + $0x850] ss:$24 sps:$4 sm:$0xff]  }
 0x287   :  { %4344 = vmatprep.subr.bf16.mxu1 %v6672_v50  ;;  %v6705_v50 = vld [vmem:[#allocation8 + $0x884] ss:$24 sps:$4 sm:$0xff]  }
 0x289   :  { %4564 = vmatpush1.bf16.msra.mxu0 %v6604_v52  ;;  %v6703_v52 = vld [vmem:[#allocation8 + $0x880] ss:$24 sps:$4 sm:$0xff]  }
 0x28a   :  { %4565 = vmatprep.subr.bf16.mxu0 %v6609_v54  ;;  %4345 = vmatpush1.bf16.msra.mxu1 %v6670_v55  ;;  %v6711_v54 = vld [vmem:[#allocation8 + $0x8b4] ss:$24 sps:$4 sm:$0xff]   ;;  %v6709_v55 = vld [vmem:[#allocation8 + $0x8b0] ss:$24 sps:$4 sm:$0xff]  }
 0x28b   :  { %4346 = vmatprep.subr.bf16.mxu1 %v6678_v56  ;;  %v6717_v56 = vld [vmem:[#allocation8 + $0x8e4] ss:$24 sps:$4 sm:$0xff]  }
 0x28d   :  { %4566 = vmatpush1.bf16.msra.mxu0 %v6607_v57  ;;  %v6715_v57 = vld [vmem:[#allocation8 + $0x8e0] ss:$24 sps:$4 sm:$0xff]  }
 0x28e   :  { %4567 = vmatprep.subr.bf16.mxu0 %v6612_v58  ;;  %4347 = vmatpush1.bf16.msra.mxu1 %v6676_v59  ;;  %v439_v58 = vsub.s32 4, %v7249_v25  ;;  %v443_v59 = vsub.s32 5, %v7249_v25 }
 0x28f   :  { %4348 = vmatprep.subr.bf16.mxu1 %v6684_v60 }
 0x290   :  { %v440_v60 = vrot.slane %v7252_v28, %v439_v58 }
 0x291   :  { %4568 = vmatpush1.bf16.msra.mxu0 %v6610_v61 }
 0x292   :  { %4569 = vmatprep.subr.bf16.mxu0 %v6615_v62  ;;  %4349 = vmatpush1.bf16.msra.mxu1 %v6682_v63  ;;  %v444_v62 = vrot.slane %v7252_v28, %v443_v59  ;;  %v6721_v28 = vld [vmem:[#allocation8 + $0x38] ss:$24 sps:$4 sm:$0xff]  }
 0x293   :  { %4350 = vmatprep.subr.bf16.mxu1 %v6690_v0 }
 0x295   :  { %4570 = vmatpush1.bf16.msra.mxu0 %v6613_v1 }
 0x296   :  { %4571 = vmatprep.subr.bf16.mxu0 %v6618_v2  ;;  %4351 = vmatpush1.bf16.msra.mxu1 %v6688_v3 }
 0x297   :  { %4352 = vmatprep.subr.bf16.mxu1 %v6696_v4 }
 0x299   :  { %4572 = vmatpush1.bf16.msra.mxu0 %v6616_v5 }
 0x29a   :  { %4573 = vmatprep.subr.bf16.mxu0 %v6621_v6  ;;  %4353 = vmatpush1.bf16.msra.mxu1 %v6694_v7 }
 0x29b   :  { %4354 = vmatprep.subr.bf16.mxu1 %v6702_v8  ;;  %v6718_v8 = vld [vmem:[#allocation8 + $0x8] ss:$24 sps:$4 sm:$0xff]  }
 0x29d   :  { %4574 = vmatpush1.bf16.msra.mxu0 %v6619_v12  ;;  %v6723_v12 = vld [vmem:[#allocation8 + $0x3c] ss:$24 sps:$4 sm:$0xff]  }
 0x29e   :  { %4586 = vmatprep.subr.bf16.mxu0 %v6627_v13  ;;  %4355 = vmatpush1.bf16.msra.mxu1 %v6700_v14  ;;  %v6726_v13 = vld [vmem:[#allocation8 + $0x6c] ss:$24 sps:$4 sm:$0xff]   ;;  %v6724_v14 = vld [vmem:[#allocation8 + $0x68] ss:$24 sps:$4 sm:$0xff]  }
 0x29f   :  { %4356 = vmatprep.subr.bf16.mxu1 %v6708_v15  ;;  %v6729_v15 = vld [vmem:[#allocation8 + $0x9c] ss:$24 sps:$4 sm:$0xff]  }
 0x2a0   :  { %4576 = vmatmul.mubr.bf16.vlgmr.msra.gmra.mrb[12].mxu0 %v7277_v10 }
 0x2a1   :  { %4587 = vmatpush1.bf16.msra.mxu0 %v6625_v16  ;;  %v6727_v16 = vld [vmem:[#allocation8 + $0x98] ss:$24 sps:$4 sm:$0xff]  }
 0x2a2   :  { %4588 = vmatprep.subr.bf16.mxu0 %v6633_v17  ;;  %4357 = vmatpush1.bf16.msra.mxu1 %v6706_v18  ;;  %v6732_v17 = vld [vmem:[#allocation8 + $0xcc] ss:$24 sps:$4 sm:$0xff]   ;;  %v6730_v18 = vld [vmem:[#allocation8 + $0xc8] ss:$24 sps:$4 sm:$0xff]  }
 0x2a3   :  { %4358 = vmatprep.subr.bf16.mxu1 %v6714_v19  ;;  %v6735_v19 = vld [vmem:[#allocation8 + $0xfc] ss:$24 sps:$4 sm:$0xff]  }
 0x2a5   :  { %4589 = vmatpush1.bf16.msra.mxu0 %v6631_v20  ;;  %v6733_v20 = vld [vmem:[#allocation8 + $0xf8] ss:$24 sps:$4 sm:$0xff]  }
 0x2a6   :  { %4590 = vmatprep.subr.bf16.mxu0 %v6639_v21  ;;  %4359 = vmatpush1.bf16.msra.mxu1 %v6712_v22  ;;  %v6738_v21 = vld [vmem:[#allocation8 + $0x12c] ss:$24 sps:$4 sm:$0xff]   ;;  %v6741_v22 = vld [vmem:[#allocation8 + $0x15c] ss:$24 sps:$4 sm:$0xff]  }
 0x2a7   :  { %4371 = vmatprep.subr.bf16.mxu1 %v6720_v23  ;;  %v6739_v23 = vld [vmem:[#allocation8 + $0x158] ss:$24 sps:$4 sm:$0xff]  }
 0x2a9   :  { %4591 = vmatpush1.bf16.msra.mxu0 %v6637_v24  ;;  %v6744_v24 = vld [vmem:[#allocation8 + $0x18c] ss:$24 sps:$4 sm:$0xff]  }
 0x2aa   :  { %4592 = vmatprep.subr.bf16.mxu0 %v6645_v27  ;;  %v6742_v27 = vld [vmem:[#allocation8 + $0x188] ss:$24 sps:$4 sm:$0xff]  }
 0x2ad   :  { %4593 = vmatpush1.bf16.msra.mxu0 %v6643_v30  ;;  %v6747_v30 = vld [vmem:[#allocation8 + $0x1bc] ss:$24 sps:$4 sm:$0xff]  }
 0x2ae   :  { %4594 = vmatprep.subr.bf16.mxu0 %v6651_v32  ;;  %v6745_v32 = vld [vmem:[#allocation8 + $0x1b8] ss:$24 sps:$4 sm:$0xff]  }
 0x2b1   :  { %4595 = vmatpush1.bf16.msra.mxu0 %v6649_v33  ;;  %v6750_v33 = vld [vmem:[#allocation8 + $0x1ec] ss:$24 sps:$4 sm:$0xff]  }
 0x2b2   :  { %4596 = vmatprep.subr.bf16.mxu0 %v6657_v35  ;;  %v6748_v35 = vld [vmem:[#allocation8 + $0x1e8] ss:$24 sps:$4 sm:$0xff]  }
 0x2b5   :  { %4597 = vmatpush1.bf16.msra.mxu0 %v6655_v9  ;;  %v6753_v9 = vld [vmem:[#allocation8 + $0x21c] ss:$24 sps:$4 sm:$0xff]  }
 0x2b6   :  { %4598 = vmatprep.subr.bf16.mxu0 %v6663_v36  ;;  %v6751_v36 = vld [vmem:[#allocation8 + $0x218] ss:$24 sps:$4 sm:$0xff]  }
 0x2b9   :  { %4599 = vmatpush1.bf16.msra.mxu0 %v6661_v37  ;;  %v6756_v37 = vld [vmem:[#allocation8 + $0x24c] ss:$24 sps:$4 sm:$0xff]  }
 0x2ba   :  { %4600 = vmatprep.subr.bf16.mxu0 %v6669_v38  ;;  %v6754_v38 = vld [vmem:[#allocation8 + $0x248] ss:$24 sps:$4 sm:$0xff]  }
 0x2bd   :  { %4601 = vmatpush1.bf16.msra.mxu0 %v6667_v39  ;;  %v6759_v39 = vld [vmem:[#allocation8 + $0x27c] ss:$24 sps:$4 sm:$0xff]  }
 0x2be   :  { %4602 = vmatprep.subr.bf16.mxu0 %v6675_v40  ;;  %v6757_v40 = vld [vmem:[#allocation8 + $0x278] ss:$24 sps:$4 sm:$0xff]  }
 0x2c1   :  { %4603 = vmatpush1.bf16.msra.mxu0 %v6673_v41  ;;  %v6762_v41 = vld [vmem:[#allocation8 + $0x2ac] ss:$24 sps:$4 sm:$0xff]  }
 0x2c2   :  { %4604 = vmatprep.subr.bf16.mxu0 %v6681_v42  ;;  %v6760_v42 = vld [vmem:[#allocation8 + $0x2a8] ss:$24 sps:$4 sm:$0xff]  }
 0x2c5   :  { %4605 = vmatpush1.bf16.msra.mxu0 %v6679_v43  ;;  %v6765_v43 = vld [vmem:[#allocation8 + $0x2dc] ss:$24 sps:$4 sm:$0xff]  }
 0x2c6   :  { %4606 = vmatprep.subr.bf16.mxu0 %v6687_v44  ;;  %v6763_v44 = vld [vmem:[#allocation8 + $0x2d8] ss:$24 sps:$4 sm:$0xff]  }
 0x2c9   :  { %4607 = vmatpush1.bf16.msra.mxu0 %v6685_v45  ;;  %v6768_v45 = vld [vmem:[#allocation8 + $0x30c] ss:$24 sps:$4 sm:$0xff]  }
 0x2ca   :  { %4608 = vmatprep.subr.bf16.mxu0 %v6693_v46  ;;  %v6766_v46 = vld [vmem:[#allocation8 + $0x308] ss:$24 sps:$4 sm:$0xff]  }
 0x2cd   :  { %4609 = vmatpush1.bf16.msra.mxu0 %v6691_v47  ;;  %v6771_v47 = vld [vmem:[#allocation8 + $0x33c] ss:$24 sps:$4 sm:$0xff]  }
 0x2ce   :  { %4610 = vmatprep.subr.bf16.mxu0 %v6699_v48  ;;  %v6769_v48 = vld [vmem:[#allocation8 + $0x338] ss:$24 sps:$4 sm:$0xff]  }
 0x2d1   :  { %4611 = vmatpush1.bf16.msra.mxu0 %v6697_v49  ;;  %v6774_v49 = vld [vmem:[#allocation8 + $0x36c] ss:$24 sps:$4 sm:$0xff]  }
 0x2d2   :  { %4612 = vmatprep.subr.bf16.mxu0 %v6705_v50  ;;  %v6772_v50 = vld [vmem:[#allocation8 + $0x368] ss:$24 sps:$4 sm:$0xff]  }
 0x2d5   :  { %4613 = vmatpush1.bf16.msra.mxu0 %v6703_v52  ;;  %v6777_v52 = vld [vmem:[#allocation8 + $0x39c] ss:$24 sps:$4 sm:$0xff]  }
 0x2d6   :  { %4614 = vmatprep.subr.bf16.mxu0 %v6711_v54  ;;  %v6775_v54 = vld [vmem:[#allocation8 + $0x398] ss:$24 sps:$4 sm:$0xff]  }
 0x2d9   :  { %4615 = vmatpush1.bf16.msra.mxu0 %v6709_v55  ;;  %v6780_v55 = vld [vmem:[#allocation8 + $0x3cc] ss:$24 sps:$4 sm:$0xff]  }
 0x2da   :  { %4616 = vmatprep.subr.bf16.mxu0 %v6717_v56  ;;  %v6778_v56 = vld [vmem:[#allocation8 + $0x3c8] ss:$24 sps:$4 sm:$0xff]  }
 0x2dd   :  { %4617 = vmatpush1.bf16.msra.mxu0 %v6715_v57  ;;  %v6783_v57 = vld [vmem:[#allocation8 + $0x3fc] ss:$24 sps:$4 sm:$0xff]  }
 0x2f3   :  { %v2467_v61 = vpop.f32.mrb[8].mxu0 }
 0x2f4   :  { %v2469_v63 = vpop.f32.mrb[9].mxu0  ;;  %v5890_v1 = vadd.f32 %v2467_v61, %v440_v60  ;;  %v6789_v61 = vld [vmem:[#allocation8 + $0x45c] ss:$24 sps:$4 sm:$0xff]  }
 0x2f5   :  { %v2471_v0 = vpop.f32.mrb[10].mxu0  ;;  %v5891_v4 = vadd.f32 %v2469_v63, %v444_v62  ;;  %v6792_v63 = vld [vmem:[#allocation8 + $0x48c] ss:$24 sps:$4 sm:$0xff]  }
 0x2f6   :  { %v5892_v2 = vadd.f32 %v2471_v0, %v440_v60  ;;  %v2473_v3 = vpop.f32.mrb[11].mxu0  ;;  %v6786_v60 = vld [vmem:[#allocation8 + $0x42c] ss:$24 sps:$4 sm:$0xff]   ;;  %v6790_v0 = vld [vmem:[#allocation8 + $0x488] ss:$24 sps:$4 sm:$0xff]  }
 0x2f7   :  { %v5893_v5 = vadd.f32 %v2473_v3, %v444_v62  ;;  %v6787_v62 = vld [vmem:[#allocation8 + $0x458] ss:$24 sps:$4 sm:$0xff]   ;;  %v6798_v3 = vld [vmem:[#allocation8 + $0x4ec] ss:$24 sps:$4 sm:$0xff]  }
 0x2f8   :  { %v7294_v6 = vpack.c.bf16 %v5892_v2, %v5890_v1  ;;  %v6795_v1 = vld [vmem:[#allocation8 + $0x4bc] ss:$24 sps:$4 sm:$0xff]   ;;  %v6793_v2 = vld [vmem:[#allocation8 + $0x4b8] ss:$24 sps:$4 sm:$0xff]  }
 0x2f9   :  { %v7296_v7 = vpack.c.bf16 %v5893_v5, %v5891_v4  ;;  %v6796_v4 = vld [vmem:[#allocation8 + $0x4e8] ss:$24 sps:$4 sm:$0xff]   ;;  %v6801_v5 = vld [vmem:[#allocation8 + $0x51c] ss:$24 sps:$4 sm:$0xff]  }
 0x2fb   :  { %4360 = vmatprep.mubr.bf16.mxu1 %v7296_v7  ;;  %4618 = vmatprep.mubr.bf16.mxu0 %v7296_v7 }
 0x2fc   :  { %4361 = vmatmul.mubr.bf16.vlgmr.msra.gmra.mrb[4].mxu1 %v7294_v6  ;;  %4619 = vmatmul.mubr.bf16.vlgmr.msra.gmra.mrb[12].mxu0 %v7294_v6 }
 0x2fd   :  { %4372 = vmatpush1.bf16.msra.mxu1 %v6718_v8  ;;  %4403 = vmatprep.mubr.bf16.mxu1 %v7272_v53  ;;  %v6736_v53 = vld [vmem:[#allocation8 + $0x128] ss:$24 sps:$4 sm:$0xff]   ;;  %v6799_v8 = vld [vmem:[#allocation8 + $0x518] ss:$24 sps:$4 sm:$0xff]  }
 0x2fe   :  { %4373 = vmatprep.subr.bf16.mxu1 %v6723_v12  ;;  %v6804_v12 = vld [vmem:[#allocation8 + $0x54c] ss:$24 sps:$4 sm:$0xff]  }
 0x301   :  { %4374 = vmatpush1.bf16.msra.mxu1 %v6721_v28  ;;  %v6802_v28 = vld [vmem:[#allocation8 + $0x548] ss:$24 sps:$4 sm:$0xff]  }
 0x302   :  { %4375 = vmatprep.subr.bf16.mxu1 %v6726_v13  ;;  %v6807_v13 = vld [vmem:[#allocation8 + $0x57c] ss:$24 sps:$4 sm:$0xff]  }
 0x305   :  { %4376 = vmatpush1.bf16.msra.mxu1 %v6724_v14  ;;  %v6805_v14 = vld [vmem:[#allocation8 + $0x578] ss:$24 sps:$4 sm:$0xff]  }
 0x306   :  { %4377 = vmatprep.subr.bf16.mxu1 %v6729_v15  ;;  %v6810_v15 = vld [vmem:[#allocation8 + $0x5ac] ss:$24 sps:$4 sm:$0xff]  }
 0x309   :  { %4378 = vmatpush1.bf16.msra.mxu1 %v6727_v16  ;;  %v6808_v16 = vld [vmem:[#allocation8 + $0x5a8] ss:$24 sps:$4 sm:$0xff]  }
 0x30a   :  { %4379 = vmatprep.subr.bf16.mxu1 %v6732_v17  ;;  %v6813_v17 = vld [vmem:[#allocation8 + $0x5dc] ss:$24 sps:$4 sm:$0xff]  }
 0x30d   :  { %4380 = vmatpush1.bf16.msra.mxu1 %v6730_v18  ;;  %v6811_v18 = vld [vmem:[#allocation8 + $0x5d8] ss:$24 sps:$4 sm:$0xff]  }
 0x30e   :  { %4381 = vmatprep.subr.bf16.mxu1 %v6735_v19  ;;  %v6816_v19 = vld [vmem:[#allocation8 + $0x60c] ss:$24 sps:$4 sm:$0xff]  }
 0x311   :  { %4382 = vmatpush1.bf16.msra.mxu1 %v6733_v20  ;;  %v6814_v20 = vld [vmem:[#allocation8 + $0x608] ss:$24 sps:$4 sm:$0xff]  }
 0x312   :  { %4383 = vmatprep.subr.bf16.mxu1 %v6738_v21  ;;  %v6819_v21 = vld [vmem:[#allocation8 + $0x63c] ss:$24 sps:$4 sm:$0xff]  }
 0x315   :  { %4384 = vmatpush1.bf16.msra.mxu1 %v6736_v53  ;;  %v6894_v53 = vld [vmem:[#allocation11 + $0xc0] sm:$0xff]  }
 0x316   :  { %4385 = vmatprep.subr.bf16.mxu1 %v6741_v22  ;;  %v6895_v22 = vld [vmem:[#allocation11 + $0x80] sm:$0xff]   ;;  %5834 = vmatprep.subr.bf16.mxu0 %v6894_v53 }
 0x317   :  { %5835 = vmatpush3.bf16.msra.mxu0 %v6895_v22 }
 0x319   :  { %4386 = vmatpush1.bf16.msra.mxu1 %v6739_v23  ;;  %v6896_v23 = vld [vmem:[#allocation11 + $0xc8] sm:$0xff]  }
 0x31a   :  { %4387 = vmatprep.subr.bf16.mxu1 %v6744_v24  ;;  %v6817_v24 = vld [vmem:[#allocation8 + $0x638] ss:$24 sps:$4 sm:$0xff]   ;;  %5836 = vmatprep.subr.bf16.mxu0 %v6896_v23 }
 0x31d   :  { %4388 = vmatpush1.bf16.msra.mxu1 %v6742_v27  ;;  %v6822_v27 = vld [vmem:[#allocation8 + $0x66c] ss:$24 sps:$4 sm:$0xff]  }
 0x31e   :  { %4389 = vmatprep.subr.bf16.mxu1 %v6747_v30  ;;  %v6897_v30 = vld [vmem:[#allocation11 + $0x88] sm:$0xff]  }
 0x31f   :  { %5837 = vmatpush3.bf16.msra.mxu0 %v6897_v30 }
 0x321   :  { %4390 = vmatpush1.bf16.msra.mxu1 %v6745_v32  ;;  %v6898_v32 = vld [vmem:[#allocation11 + $0xd0] sm:$0xff]  }
 0x322   :  { %4391 = vmatprep.subr.bf16.mxu1 %v6750_v33  ;;  %v6820_v33 = vld [vmem:[#allocation8 + $0x668] ss:$24 sps:$4 sm:$0xff]   ;;  %5838 = vmatprep.subr.bf16.mxu0 %v6898_v32 }
 0x325   :  { %4392 = vmatpush1.bf16.msra.mxu1 %v6748_v35  ;;  %v6825_v35 = vld [vmem:[#allocation8 + $0x69c] ss:$24 sps:$4 sm:$0xff]  }
 0x326   :  { %4393 = vmatprep.subr.bf16.mxu1 %v6753_v9  ;;  %v6900_v9 = vld [vmem:[#allocation11 + $0xd8] sm:$0xff]  }
 0x329   :  { %4394 = vmatpush1.bf16.msra.mxu1 %v6751_v36  ;;  %v6823_v36 = vld [vmem:[#allocation8 + $0x698] ss:$24 sps:$4 sm:$0xff]  }
 0x32a   :  { %4395 = vmatprep.subr.bf16.mxu1 %v6756_v37  ;;  %v6901_v37 = vld [vmem:[#allocation11 + $0x98] sm:$0xff]  }
 0x32d   :  { %4396 = vmatpush1.bf16.msra.mxu1 %v6754_v38  ;;  %v6902_v38 = vld [vmem:[#allocation11 + $0xe0] sm:$0xff]  }
 0x32e   :  { %4397 = vmatprep.subr.bf16.mxu1 %v6759_v39  ;;  %v6826_v39 = vld [vmem:[#allocation8 + $0x6c8] ss:$24 sps:$4 sm:$0xff]  }
 0x331   :  { %4398 = vmatpush1.bf16.msra.mxu1 %v6757_v40  ;;  %v6831_v40 = vld [vmem:[#allocation8 + $0x6fc] ss:$24 sps:$4 sm:$0xff]  }
 0x332   :  { %4399 = vmatprep.subr.bf16.mxu1 %v6762_v41  ;;  %v6903_v41 = vld [vmem:[#allocation11 + $0xa0] sm:$0xff]  }
 0x335   :  { %4400 = vmatpush1.bf16.msra.mxu1 %v6760_v42  ;;  %v6904_v42 = vld [vmem:[#allocation11 + $0xe8] sm:$0xff]  }
 0x336   :  { %4401 = vmatprep.subr.bf16.mxu1 %v6765_v43  ;;  %v6829_v43 = vld [vmem:[#allocation8 + $0x6f8] ss:$24 sps:$4 sm:$0xff]  }
 0x339   :  { %4402 = vmatpush1.bf16.msra.mxu1 %v6763_v44  ;;  %v6834_v44 = vld [vmem:[#allocation8 + $0x72c] ss:$24 sps:$4 sm:$0xff]  }
 0x33a   :  { %4414 = vmatprep.subr.bf16.mxu1 %v6768_v45  ;;  %v6905_v45 = vld [vmem:[#allocation11 + $0xa8] sm:$0xff]  }
 0x33c   :  { %4404 = vmatmul.mubr.bf16.vlgmr.msra.gmra.mrb[8].mxu1 %v7270_v51  ;;  %v6781_v51 = vld [vmem:[#allocation8 + $0x3f8] ss:$24 sps:$4 sm:$0xff]  }
 0x33d   :  { %4415 = vmatpush1.bf16.msra.mxu1 %v6766_v46  ;;  %4446 = vmatprep.mubr.bf16.mxu1 %v7279_v11  ;;  %v6784_v11 = vld [vmem:[#allocation8 + $0x428] ss:$24 sps:$4 sm:$0xff]  }
 0x33e   :  { %4416 = vmatprep.subr.bf16.mxu1 %v6771_v47  ;;  %v6832_v46 = vld [vmem:[#allocation8 + $0x728] ss:$24 sps:$4 sm:$0xff]   ;;  %v6837_v47 = vld [vmem:[#allocation8 + $0x75c] ss:$24 sps:$4 sm:$0xff]  }
 0x341   :  { %4417 = vmatpush1.bf16.msra.mxu1 %v6769_v48  ;;  %v6835_v48 = vld [vmem:[#allocation8 + $0x758] ss:$24 sps:$4 sm:$0xff]  }
 0x342   :  { %4418 = vmatprep.subr.bf16.mxu1 %v6774_v49  ;;  %v6840_v49 = vld [vmem:[#allocation8 + $0x78c] ss:$24 sps:$4 sm:$0xff]  }
 0x345   :  { %4419 = vmatpush1.bf16.msra.mxu1 %v6772_v50  ;;  %v6838_v50 = vld [vmem:[#allocation8 + $0x788] ss:$24 sps:$4 sm:$0xff]  }
 0x346   :  { %4420 = vmatprep.subr.bf16.mxu1 %v6777_v52  ;;  %v6843_v52 = vld [vmem:[#allocation8 + $0x7bc] ss:$24 sps:$4 sm:$0xff]  }
 0x349   :  { %4421 = vmatpush1.bf16.msra.mxu1 %v6775_v54  ;;  %v6841_v54 = vld [vmem:[#allocation8 + $0x7b8] ss:$24 sps:$4 sm:$0xff]  }
 0x34a   :  { %4422 = vmatprep.subr.bf16.mxu1 %v6780_v55  ;;  %v6846_v55 = vld [vmem:[#allocation8 + $0x7ec] ss:$24 sps:$4 sm:$0xff]  }
 0x34d   :  { %4423 = vmatpush1.bf16.msra.mxu1 %v6778_v56  ;;  %v6844_v56 = vld [vmem:[#allocation8 + $0x7e8] ss:$24 sps:$4 sm:$0xff]  }
 0x34e   :  { %4424 = vmatprep.subr.bf16.mxu1 %v6783_v57  ;;  %v6849_v57 = vld [vmem:[#allocation8 + $0x81c] ss:$24 sps:$4 sm:$0xff]  }
 0x351   :  { %4425 = vmatpush1.bf16.msra.mxu1 %v6781_v51  ;;  %v6847_v51 = vld [vmem:[#allocation8 + $0x818] ss:$24 sps:$4 sm:$0xff]  }
 0x352   :  { %4426 = vmatprep.subr.bf16.mxu1 %v6786_v60  ;;  %v6852_v60 = vld [vmem:[#allocation8 + $0x84c] ss:$24 sps:$4 sm:$0xff]  }
 0x355   :  { %4427 = vmatpush1.bf16.msra.mxu1 %v6784_v11  ;;  %v6850_v11 = vld [vmem:[#allocation8 + $0x848] ss:$24 sps:$4 sm:$0xff]  }
 0x356   :  { %4428 = vmatprep.subr.bf16.mxu1 %v6789_v61  ;;  %v6855_v61 = vld [vmem:[#allocation8 + $0x87c] ss:$24 sps:$4 sm:$0xff]  }
 0x359   :  { %4429 = vmatpush1.bf16.msra.mxu1 %v6787_v62  ;;  %v6853_v62 = vld [vmem:[#allocation8 + $0x878] ss:$24 sps:$4 sm:$0xff]  }
 0x35a   :  { %4430 = vmatprep.subr.bf16.mxu1 %v6792_v63  ;;  %v6858_v63 = vld [vmem:[#allocation8 + $0x8ac] ss:$24 sps:$4 sm:$0xff]  }
 0x35d   :  { %4431 = vmatpush1.bf16.msra.mxu1 %v6790_v0  ;;  %v6856_v0 = vld [vmem:[#allocation8 + $0x8a8] ss:$24 sps:$4 sm:$0xff]  }
 0x35e   :  { %4432 = vmatprep.subr.bf16.mxu1 %v6795_v1  ;;  %v6861_v1 = vld [vmem:[#allocation8 + $0x8dc] ss:$24 sps:$4 sm:$0xff]  }
 0x361   :  { %4433 = vmatpush1.bf16.msra.mxu1 %v6793_v2  ;;  %v6859_v2 = vld [vmem:[#allocation8 + $0x8d8] ss:$24 sps:$4 sm:$0xff]  }
 0x362   :  { %4434 = vmatprep.subr.bf16.mxu1 %v6798_v3  ;;  %v6862_v3 = vld [vmem:[#allocation11 + $0x40] sm:$0xff]  }
 0x365   :  { %4435 = vmatpush1.bf16.msra.mxu1 %v6796_v4  ;;  %v6863_v4 = vld [vmem:[#allocation11] sm:$0xff]  }
 0x366   :  { %4436 = vmatprep.subr.bf16.mxu1 %v6801_v5  ;;  %v6864_v5 = vld [vmem:[#allocation11 + $0x48] sm:$0xff]  }
 0x369   :  { %4437 = vmatpush1.bf16.msra.mxu1 %v6799_v8  ;;  %v6865_v8 = vld [vmem:[#allocation11 + $0x8] sm:$0xff]  }
 0x36a   :  { %4438 = vmatprep.subr.bf16.mxu1 %v6804_v12  ;;  %v6866_v12 = vld [vmem:[#allocation11 + $0x50] sm:$0xff]  }
 0x36d   :  { %4439 = vmatpush1.bf16.msra.mxu1 %v6802_v28  ;;  %v6867_v28 = vld [vmem:[#allocation11 + $0x10] sm:$0xff]  }
 0x36e   :  { %4440 = vmatprep.subr.bf16.mxu1 %v6807_v13  ;;  %v6868_v13 = vld [vmem:[#allocation11 + $0x58] sm:$0xff]  }
 0x371   :  { %4441 = vmatpush1.bf16.msra.mxu1 %v6805_v14  ;;  %v6869_v14 = vld [vmem:[#allocation11 + $0x18] sm:$0xff]  }
 0x372   :  { %4442 = vmatprep.subr.bf16.mxu1 %v6810_v15  ;;  %v6870_v15 = vld [vmem:[#allocation11 + $0x60] sm:$0xff]  }
 0x375   :  { %4443 = vmatpush1.bf16.msra.mxu1 %v6808_v16  ;;  %v6871_v16 = vld [vmem:[#allocation11 + $0x20] sm:$0xff]  }
 0x376   :  { %4444 = vmatprep.subr.bf16.mxu1 %v6813_v17  ;;  %v6872_v17 = vld [vmem:[#allocation11 + $0x68] sm:$0xff]  }
 0x379   :  { %4445 = vmatpush1.bf16.msra.mxu1 %v6811_v18  ;;  %v7308_v18 = vld [vmem:[#allocation10] sm:$0x3f] }
 0x37a   :  { %4457 = vmatprep.subr.bf16.mxu1 %v6816_v19  ;;  %v2775_v19 = vrot.slane %v7308_v18, %v423_v26  ;;  %v2779_v23 = vrot.slane %v7308_v18, %v427_v29 }
 0x37c   :  { %4447 = vmatmul.mubr.bf16.vlgmr.msra.gmra.mrb[8].mxu1 %v7277_v10  ;;  %v6899_v10 = vld [vmem:[#allocation11 + $0x90] sm:$0xff]  }
 0x37d   :  { %4458 = vmatpush1.bf16.msra.mxu1 %v6814_v20  ;;  %4489 = vmatprep.mubr.bf16.mxu1 %v7296_v7  ;;  %v6828_v7 = vld [vmem:[#allocation8 + $0x6cc] ss:$24 sps:$4 sm:$0xff]   ;;  %v2791_v20 = vrot.slane %v7308_v18, %v439_v58 }
 0x37e   :  { %4459 = vmatprep.subr.bf16.mxu1 %v6819_v21  ;;  %5839 = vmatpush3.bf16.msra.mxu0 %v6899_v10  ;;  %v6874_v21 = vld [vmem:[#allocation11 + $0x70] sm:$0xff]  }
 0x37f   :  { %5840 = vmatprep.subr.bf16.mxu0 %v6900_v9 }
 0x381   :  { %4460 = vmatpush1.bf16.msra.mxu1 %v6817_v24  ;;  %v2795_v24 = vrot.slane %v7308_v18, %v443_v59 }
 0x382   :  { %4461 = vmatprep.subr.bf16.mxu1 %v6822_v27  ;;  %5841 = vmatpush3.bf16.msra.mxu0 %v6901_v37  ;;  %v6876_v37 = vld [vmem:[#allocation11 + $0x78] sm:$0xff]  }
 0x383   :  { %5842 = vmatprep.subr.bf16.mxu0 %v6902_v38 }
 0x385   :  { %4462 = vmatpush1.bf16.msra.mxu1 %v6820_v33  ;;  %v6875_v33 = vld [vmem:[#allocation11 + $0x30] sm:$0xff]  }
 0x386   :  { %4463 = vmatprep.subr.bf16.mxu1 %v6825_v35  ;;  %5843 = vmatpush3.bf16.msra.mxu0 %v6903_v41 }
 0x387   :  { %5844 = vmatprep.subr.bf16.mxu0 %v6904_v42 }
 0x389   :  { %4464 = vmatpush1.bf16.msra.mxu1 %v6823_v36 }
 0x38a   :  { %4465 = vmatprep.subr.bf16.mxu1 %v6828_v7  ;;  %5845 = vmatpush3.bf16.msra.mxu0 %v6905_v45  ;;  %v6878_v45 = vld [vmem:[#allocation11 + $0x140] sm:$0xff]  }
 0x38d   :  { %4466 = vmatpush1.bf16.msra.mxu1 %v6826_v39 }
 0x38e   :  { %4467 = vmatprep.subr.bf16.mxu1 %v6831_v40 }
 0x391   :  { %4468 = vmatpush1.bf16.msra.mxu1 %v6829_v43 }
 0x392   :  { %4469 = vmatprep.subr.bf16.mxu1 %v6834_v44  ;;  %v6877_v44 = vld [vmem:[#allocation11 + $0x38] sm:$0xff]  }
 0x395   :  { %4470 = vmatpush1.bf16.msra.mxu1 %v6832_v46  ;;  %v6879_v46 = vld [vmem:[#allocation11 + $0x100] sm:$0xff]  }
 0x396   :  { %4471 = vmatprep.subr.bf16.mxu1 %v6837_v47  ;;  %v6880_v47 = vld [vmem:[#allocation11 + $0x148] sm:$0xff]  }
 0x399   :  { %4472 = vmatpush1.bf16.msra.mxu1 %v6835_v48  ;;  %v6881_v48 = vld [vmem:[#allocation11 + $0x108] sm:$0xff]  }
 0x39a   :  { %4473 = vmatprep.subr.bf16.mxu1 %v6840_v49  ;;  %v6882_v49 = vld [vmem:[#allocation11 + $0x150] sm:$0xff]  }
 0x39d   :  { %4474 = vmatpush1.bf16.msra.mxu1 %v6838_v50  ;;  %v6883_v50 = vld [vmem:[#allocation11 + $0x110] sm:$0xff]  }
 0x39e   :  { %4475 = vmatprep.subr.bf16.mxu1 %v6843_v52  ;;  %v6884_v52 = vld [vmem:[#allocation11 + $0x158] sm:$0xff]  }
 0x3a1   :  { %4476 = vmatpush1.bf16.msra.mxu1 %v6841_v54  ;;  %v6885_v54 = vld [vmem:[#allocation11 + $0x118] sm:$0xff]  }
 0x3a2   :  { %4477 = vmatprep.subr.bf16.mxu1 %v6846_v55  ;;  %v6886_v55 = vld [vmem:[#allocation11 + $0x160] sm:$0xff]  }
 0x3a5   :  { %4478 = vmatpush1.bf16.msra.mxu1 %v6844_v56  ;;  %v6887_v56 = vld [vmem:[#allocation11 + $0x120] sm:$0xff]  }
 0x3a6   :  { %4479 = vmatprep.subr.bf16.mxu1 %v6849_v57  ;;  %v6888_v57 = vld [vmem:[#allocation11 + $0x168] sm:$0xff]  }
 0x3a9   :  { %4480 = vmatpush1.bf16.msra.mxu1 %v6847_v51  ;;  %v6889_v51 = vld [vmem:[#allocation11 + $0x128] sm:$0xff]  }
 0x3aa   :  { %4481 = vmatprep.subr.bf16.mxu1 %v6852_v60  ;;  %v6890_v60 = vld [vmem:[#allocation11 + $0x170] sm:$0xff]  }
 0x3ad   :  { %4482 = vmatpush1.bf16.msra.mxu1 %v6850_v11  ;;  %v6891_v11 = vld [vmem:[#allocation11 + $0x130] sm:$0xff]  }
 0x3ae   :  { %4483 = vmatprep.subr.bf16.mxu1 %v6855_v61  ;;  %v6892_v61 = vld [vmem:[#allocation11 + $0x178] sm:$0xff]  }
 0x3b1   :  { %4484 = vmatpush1.bf16.msra.mxu1 %v6853_v62  ;;  %v6893_v62 = vld [vmem:[#allocation11 + $0x138] sm:$0xff]  }
 0x3b2   :  { %4485 = vmatprep.subr.bf16.mxu1 %v6858_v63  ;;  %v6906_v63 = vld [vmem:[#allocation11 + $0xf0] sm:$0xff]  }
 0x3b3   :  { %5846 = vmatprep.subr.bf16.mxu0 %v6906_v63 }
 0x3b5   :  { %4486 = vmatpush1.bf16.msra.mxu1 %v6856_v0  ;;  %v6907_v0 = vld [vmem:[#allocation11 + $0xb0] sm:$0xff]  }
 0x3b6   :  { %4487 = vmatprep.subr.bf16.mxu1 %v6861_v1  ;;  %5847 = vmatpush3.bf16.msra.mxu0 %v6907_v0  ;;  %v6908_v1 = vld [vmem:[#allocation11 + $0xf8] sm:$0xff]  }
 0x3b7   :  { %5848 = vmatprep.subr.bf16.mxu0 %v6908_v1 }
 0x3b9   :  { %4488 = vmatpush1.bf16.msra.mxu1 %v6859_v2  ;;  %v6909_v2 = vld [vmem:[#allocation11 + $0xb8] sm:$0xff]  }
 0x3ba   :  { %5812 = vmatprep.subr.bf16.mxu1 %v6862_v3  ;;  %5849 = vmatpush3.bf16.msra.mxu0 %v6909_v2  ;;  %v2783_v3 = vrot.slane %v7308_v18, %v431_v31 }
 0x3bc   :  { %4490 = vmatmul.mubr.bf16.vlgmr.msra.gmra.mrb[8].mxu1 %v7294_v6  ;;  %v6873_v6 = vld [vmem:[#allocation11 + $0x28] sm:$0xff]  }
 0x3bd   :  { %5813 = vmatpush3.bf16.msra.mxu1 %v6863_v4 }
 0x3be   :  { %5814 = vmatprep.subr.bf16.mxu1 %v6864_v5  ;;  %v2787_v5 = vrot.slane %v7308_v18, %v435_v34 }
 0x3c1   :  { %5815 = vmatpush3.bf16.msra.mxu1 %v6865_v8 }
 0x3c2   :  { %5816 = vmatprep.subr.bf16.mxu1 %v6866_v12 }
 0x3c5   :  { %5817 = vmatpush3.bf16.msra.mxu1 %v6867_v28 }
 0x3c6   :  { %5818 = vmatprep.subr.bf16.mxu1 %v6868_v13 }
 0x3c9   :  { %5819 = vmatpush3.bf16.msra.mxu1 %v6869_v14 }
 0x3ca   :  { %5820 = vmatprep.subr.bf16.mxu1 %v6870_v15 }
 0x3cd   :  { %5821 = vmatpush3.bf16.msra.mxu1 %v6871_v16 }
 0x3ce   :  { %5822 = vmatprep.subr.bf16.mxu1 %v6872_v17 }
 0x3cf   :  { %v4362_v53 = vpop.f32.mrb[4].mxu1  ;;  %v4620_v22 = vpop.f32.mrb[12].mxu0 }
 0x3d0   :  { %v4364_v27 = vpop.f32.mrb[5].mxu1  ;;  %v4622_v30 = vpop.f32.mrb[13].mxu0  ;;  %v5894_v35 = vadd.f32 %v4362_v53, %v2775_v19  ;;  %v5902_v58 = vadd.f32 %v4620_v22, %v2791_v20 }
 0x3d1   :  { %5823 = vmatpush3.bf16.msra.mxu1 %v6873_v6  ;;  %v4366_v26 = vpop.f32.mrb[6].mxu1  ;;  %v4624_v32 = vpop.f32.mrb[14].mxu0  ;;  %v5895_v38 = vadd.f32 %v4364_v27, %v2779_v23  ;;  %v5903_v29 = vadd.f32 %v4622_v30, %v2795_v24  ;;  %v5763_v30 = vld [vmem:[#allocation13] ss:$0 sm:$0xff] }
 0x3d2   :  { %v5896_v10 = vadd.f32 %v4366_v26, %v2775_v19  ;;  %v5904_v9 = vadd.f32 %v4624_v32, %v2791_v20  ;;  %v4368_v36 = vpop.f32.mrb[7].mxu1  ;;  %v4626_v7 = vpop.f32.mrb[15].mxu0  ;;  %5824 = vmatprep.subr.bf16.mxu1 %v6874_v21 }
 0x3d3   :  { %v5897_v39 = vadd.f32 %v4368_v36, %v2779_v23  ;;  %v5905_v40 = vadd.f32 %v4626_v7, %v2795_v24 }
 0x3d4   :  { %v4629_v41 = vpack.c.bf16 %v5896_v10, %v5894_v35  ;;  %v4633_v59 = vpack.c.bf16 %v5904_v9, %v5902_v58 }
 0x3d5   :  { %v4630_v42 = vpack.c.bf16 %v5897_v39, %v5895_v38  ;;  %v4634_v43 = vpack.c.bf16 %v5905_v40, %v5903_v29  ;;  %5825 = vmatpush3.bf16.msra.mxu1 %v6875_v33 }
 0x3d6   :  { %5826 = vmatprep.subr.bf16.mxu1 %v6876_v37 }
 0x3d7   :  { %5058 = vmatprep.mubr.bf16.mxu1 %v4630_v42 }
 0x3d9   :  { %5827 = vmatpush3.bf16.msra.mxu1 %v6877_v44 }
 0x3da   :  { %5856 = vmatprep.subr.bf16.mxu1 %v6878_v45 }
 0x3dc   :  { %5059 = vmatmul.mubr.bf16.vlgmr.msra.gmra.mrb[12].mxu1 %v4629_v41 }
 0x3dd   :  { %5857 = vmatpush3.bf16.msra.mxu1 %v6879_v46  ;;  %5140 = vmatprep.mubr.bf16.mxu1 %v4634_v43 }
 0x3de   :  { %5858 = vmatprep.subr.bf16.mxu1 %v6880_v47 }
 0x3e1   :  { %5859 = vmatpush3.bf16.msra.mxu1 %v6881_v48 }
 0x3e2   :  { %5860 = vmatprep.subr.bf16.mxu1 %v6882_v49 }
 0x3e5   :  { %5861 = vmatpush3.bf16.msra.mxu1 %v6883_v50 }
 0x3e6   :  { %5862 = vmatprep.subr.bf16.mxu1 %v6884_v52 }
 0x3e9   :  { %5863 = vmatpush3.bf16.msra.mxu1 %v6885_v54 }
 0x3ea   :  { %5864 = vmatprep.subr.bf16.mxu1 %v6886_v55 }
 0x3ed   :  { %5865 = vmatpush3.bf16.msra.mxu1 %v6887_v56 }
 0x3ee   :  { %5866 = vmatprep.subr.bf16.mxu1 %v6888_v57 }
 0x3f1   :  { %5867 = vmatpush3.bf16.msra.mxu1 %v6889_v51 }
 0x3f2   :  { %5868 = vmatprep.subr.bf16.mxu1 %v6890_v60 }
 0x3f5   :  { %5869 = vmatpush3.bf16.msra.mxu1 %v6891_v11 }
 0x3f6   :  { %5870 = vmatprep.subr.bf16.mxu1 %v6892_v61 }
 0x3f9   :  { %5871 = vmatpush3.bf16.msra.mxu1 %v6893_v62 }
 0x3fc   :  { %5141 = vmatmul.mubr.bf16.vlgmr.msra.gmra.mrb[16].mxu1 %v4633_v59 }
 0x48f   :  { %v4491_v4 = vpop.f32.mrb[8].mxu1 }
 0x490   :  { %v4493_v8 = vpop.f32.mrb[9].mxu1  ;;  %v5898_v28 = vadd.f32 %v4491_v4, %v2783_v3 }
 0x491   :  { %v4495_v12 = vpop.f32.mrb[10].mxu1  ;;  %v5899_v15 = vadd.f32 %v4493_v8, %v2787_v5 }
 0x492   :  { %v5900_v13 = vadd.f32 %v4495_v12, %v2783_v3  ;;  %v4497_v14 = vpop.f32.mrb[11].mxu1 }
 0x493   :  { %v5901_v16 = vadd.f32 %v4497_v14, %v2787_v5 }
 0x494   :  { %v4631_v17 = vpack.c.bf16 %v5900_v13, %v5898_v28 }
 0x495   :  { %v4632_v6 = vpack.c.bf16 %v5901_v16, %v5899_v15 }
 0x497   :  { %5099 = vmatprep.mubr.bf16.mxu0 %v4632_v6 }
 0x498   :  { %5100 = vmatmul.mubr.bf16.vlgmr.msra.gmra.mrb[16].mxu0 %v4631_v17 }
 0x4af   :  { %v5828_v19 = vpop.f32.mrb[12].mxu1 }
 0x4b0   :  { %v5829_v20 = vpop.f32.mrb[13].mxu1 }
 0x4b1   :  { %v5830_v21 = vadd.f32 %v5829_v20, %v5828_v19  ;;  %v5831_v31 = vpop.f32.mrb[14].mxu1 }
 0x4b2   :  { %v5832_v53 = vpop.f32.mrb[15].mxu1 }
 0x4b3   :  { %v5833_v22 = vadd.f32 %v5832_v53, %v5831_v31  ;;  %v5061_v33 = vadd.f32 %v5830_v21, %v5763_v30 }
 0x4b5   :  { %v5064_v9 = vadd.f32 %v5833_v22, %v5763_v30 }
 0x4cf   :  { %v5872_v25 = vpop.f32.mrb[16].mxu1 }
 0x4d0   :  { %v5873_v23 = vpop.f32.mrb[17].mxu1 }
 0x4d1   :  { %v5874_v34 = vadd.f32 %v5873_v23, %v5872_v25  ;;  %v5875_v18 = vpop.f32.mrb[18].mxu1 }
 0x4d2   :  { %v5876_v24 = vpop.f32.mrb[19].mxu1 }
 0x4d3   :  { %v5877_v27 = vadd.f32 %v5876_v24, %v5875_v18 }
 0x56b   :  { %v5850_v26 = vpop.f32.mrb[16].mxu0 }
 0x56c   :  { %v5851_v32 = vpop.f32.mrb[17].mxu0 }
 0x56d   :  { %v5852_v35 = vadd.f32 %v5851_v32, %v5850_v26  ;;  %v5853_v58 = vpop.f32.mrb[18].mxu0 }
 0x56e   :  { %v5854_v10 = vpop.f32.mrb[19].mxu0 }
 0x56f   :  { %v5102_v36 = vadd.f32 %v5852_v35, %v5061_v33  ;;  %v5855_v7 = vadd.f32 %v5854_v10, %v5853_v58 }
 0x571   :  { %v5143_v37 = vadd.f32 %v5874_v34, %v5102_v36  ;;  %v5105_v38 = vadd.f32 %v5855_v7, %v5064_v9 }
 0x573   :  { %5149 = vst [vmem:[#allocation14] sm:$0xff] %v5143_v37  ;;  %v5146_v29 = vadd.f32 %v5877_v27, %v5105_v38 }
 0x575   :  { %5150 = vst [vmem:[#allocation14 + $0x8] sm:$0xff] %v5146_v29 }
 0x576   :  { %7082 = shalt.err (!%p7079_p4)
}
 0x577   :  { %s7083_s15 = scalar_lea.hbm %s7347_s7, 256 }
 0x578   :  { %p7084_p5 = scmp.ne.s32.totalorder %s7347_s7, %s7083_s15  ;;  %p7087_p6 = scmp.lt.u32.totalorder %s7083_s15, %s7347_s7 }
 0x57a   :  { %p7089_p7 = pnand %p7087_p6, %p7084_p5 }
 0x57c   :  { %7092 = shalt.err (!%p7089_p7)
}
 0x57d   :  { %s7118_s21 = smov 128   ;;  %s7119_s22 = smov 8  }
 0x57e   :  { %5162 = dma.vmem_to_hbm [thread:$0]  %s5157_s3, 256, %s7347_s7, [#allocation4], %s7118_s21, %s7118_s21, %s7119_s22  }
 0x57f   :  { %7101 = dma.done.wait [#allocation4], 256  }
 0x580   :  { %7102 = vsyncadd [#allocation4], 4294967040 }
 0x581   :  { %5166 = vsyncpa [#allocation3], 1 }
 0x582   :  { %5167 = vsyncpa [#allocation6], 1 }
 0x583   :  { %5168 = vsyncpa [#allocation9], 1 }
 0x584   :  { %5169 = vsyncpa [#allocation12], 1 }
 0x585   :  { %5170 = vsyncpa [#allocation4], 1 }

</bundles_post_ra>
